<compile_context>
chip_gen: v7x
topology: tpu7x:2x2x1
jax: 0.10.0
libtpu: 0.0.40
codegen_flags: <defaults>
</compile_context>

<pallas_src>
import functools
import math

import numpy as np
import jax
import jax.numpy as jnp
from jax import lax
from jax.experimental import pallas as pl
from jax.experimental.pallas import tpu as pltpu

CP = 128  # padded (lane-dense) channel width used inside the fused kernel


# --------------------------------------------------------------------------
# Fused Pallas kernel
# --------------------------------------------------------------------------

def _manet_kernel(x_ref, wsq_ref, wdw_ref, b_ref, node_ref, out_ref,
                  *, B, N, d_real, num_layer):
    f32 = jnp.float32
    BN = B * N

    lane = lax.broadcasted_iota(jnp.int32, (BN, CP), 1)
    chan_mask = lane < d_real                       # real d_model lanes

    # same-batch block-diagonal membership matrix (float trick, no int division)
    ri = lax.broadcasted_iota(jnp.int32, (BN, BN), 0).astype(f32)
    ci = lax.broadcasted_iota(jnp.int32, (BN, BN), 1).astype(f32)
    inv_n = 1.0 / N
    G = (jnp.floor((ri + 0.5) * inv_n) == jnp.floor((ci + 0.5) * inv_n)).astype(f32)

    def mm(x, w):                                   # MXU: bf16 operands, f32 accumulate
        return jnp.dot(x.astype(w.dtype), w, preferred_element_type=f32)

    def bias(i):                                    # [1, CP] row of the bias slab
        return b_ref[pl.ds(i, 1), :]

    inv_count = 1.0 / float(N * d_real)

    def layer_norm(x, eps=1e-5):
        # joint (d_model, num_nodes) stats per batch element; padded + trend lanes
        # are masked out of mean/var and zeroed in the output.
        xm = jnp.where(chan_mask, x, 0.0)
        gsum = jnp.dot(G, xm, preferred_element_type=f32)       # per-batch group sums
        mean = jnp.sum(gsum, axis=-1, keepdims=True) * inv_count
        cb = jnp.where(chan_mask, x - mean, 0.0)
        gsq = jnp.dot(G, cb * cb, preferred_element_type=f32)
        var = jnp.sum(gsq, axis=-1, keepdims=True) * inv_count
        return cb * lax.rsqrt(var + eps)

    x_in = x_ref[...]                               # [BN, CP] packed ts_in | raw | aux

    # ---- fused input projection: ts-emb conv + tid/diw/node pass-through +
    #      seasonal (I - LD) + trend (LD), each placed in its destination lanes ----
    hidden1 = mm(x_in, wsq_ref[0]) + bias(0)

    # ---- TemporalConvNet: width-1 input == 1x1 conv (2nd tap) + ReLU ---------
    tc = jnp.maximum(mm(hidden1, wsq_ref[1]) + bias(1), 0.0)
    hidden1 = hidden1 + tc

    # ---- SpatialAttention -----------------------------------------------------
    qv = mm(hidden1, wdw_ref[0])                    # [Wq | Wv] stacked, 256 wide
    q = jnp.maximum(qv[:, :CP] + bias(2), 0.0)
    v = jnp.maximum(qv[:, CP:] + bias(3), 0.0)

    scale = 1.0 / math.sqrt(d_real)
    qs = jnp.where(chan_mask, q * scale, -1e30)
    qe = jnp.exp(qs - jnp.max(qs, axis=-1, keepdims=True))
    q_sm = qe / jnp.sum(qe, axis=-1, keepdims=True)  # exact normalization

    key_bn = node_ref[0]                            # softmax(memory/sqrt(dk)), B-tiled
    s_full = node_ref[1]                            # per-node dynamic scale (bcast)
    dyn_b = node_ref[2]                             # Aapt @ bias_pool, B-tiled
    w_aff1 = node_ref[3]                            # (affine weight + 1), B-tiled
    b_aff = node_ref[4]                             # affine bias, B-tiled

    # re-associated attention: scores = q_sm @ key^T, block-diag masked, then @ v
    scores = lax.dot_general(q_sm, key_bn, (((1,), (1,)), ((), ())),
                             preferred_element_type=f32)        # [BN, BN]
    attn = (jnp.dot(scores * G, v, preferred_element_type=f32)
            + v * s_full + dyn_b)

    xc = jnp.maximum(mm(attn, wsq_ref[2]) + bias(4), 0.0)
    xa = xc * w_aff1 + b_aff                        # x*w + b + x  (affine #1)

    # ---- Encoder: residual + LayerNorm + GLU ---------------------------------
    x = layer_norm(xa + hidden1)

    h12 = mm(x, wdw_ref[1])                         # [Wglu1 | Wglu2] stacked
    h1 = h12[:, :CP] + bias(5)
    h2 = h12[:, CP:] + bias(6)
    g = h1 * (0.5 * (jnp.tanh(0.5 * h2) + 1.0))     # exact, overflow-safe sigmoid
    glu_out = mm(g, wsq_ref[3]) + bias(7)

    x = glu_out + x
    x = x * w_aff1 + b_aff                          # affine #2
    dat = layer_norm(x)

    # enc_out + trend: trend rode along in hidden1 lanes [d_model, d_model+L)
    h = hidden1 + dat

    # ---- MLP encoder stack ----------------------------------------------------
    # TODO(synk): MultiLayerPerceptron is not defined in the provided source; using the
    # standard STID residual MLP (1x1 conv -> ReLU -> Dropout(identity) -> 1x1 conv + res).
    for l in range(num_layer):
        hh = jnp.maximum(mm(h, wsq_ref[4 + 2 * l]) + bias(8 + 2 * l), 0.0)
        hh = mm(hh, wsq_ref[5 + 2 * l]) + bias(9 + 2 * l)
        h = h + hh

    # ---- regression head (output lanes padded to 128 -> lane-dense store) ----
    out_ref[...] = mm(h, wsq_ref[4 + 2 * num_layer]) + bias(8 + 2 * num_layer)


def _full_spec(a):
    # whole array resident in VMEM; grid=(1,)
    return pl.BlockSpec(a.shape, lambda i, nd=len(a.shape): (0,) * nd)


def manet_fused_call(kernel_inputs, *, B, N, d_real, num_layer):
    BN = B * N
    n_sq = 5 + 2 * num_layer
    flops = 2 * BN * CP * CP * (n_sq + 4) + 8 * BN * BN * CP
    bytes_accessed = int(sum(int(a.size) * a.dtype.itemsize for a in kernel_inputs)
                         + BN * CP * 4)
    cost = pl.CostEstimate(flops=int(flops), transcendentals=int(2 * BN * CP),
                           bytes_accessed=bytes_accessed)
    return pl.pallas_call(
        functools.partial(_manet_kernel, B=B, N=N, d_real=d_real, num_layer=num_layer),
        out_shape=jax.ShapeDtypeStruct((BN, CP), jnp.float32),
        grid=(1,),
        in_specs=[_full_spec(a) for a in kernel_inputs],
        out_specs=pl.BlockSpec((BN, CP), lambda i: (0, 0)),
        compiler_params=pltpu.CompilerParams(dimension_semantics=("arbitrary",)),
        cost_estimate=cost,
    )(*kernel_inputs)


# --------------------------------------------------------------------------
# Parameter construction (all padding / stacking / param-only math hoisted here)
# --------------------------------------------------------------------------

def _xavier(key, shape):
    fan_in, fan_out = shape[0], shape[-1]
    limit = math.sqrt(6.0 / (fan_in + fan_out))
    return jax.random.uniform(key, shape, jnp.float32, -limit, limit)


def _ld_matrix(L, kernel_size=25, sigma=1.0):
    """LD Gaussian(softmax) smoother with replicate padding as an LxL matrix."""
    half = kernel_size // 2
    g = np.array([math.exp(-(((i - half) / (2.0 * sigma)) ** 2))
                  for i in range(kernel_size)], dtype=np.float64)
    e = np.exp(g - g.max())
    taps = (e / e.sum()).astype(np.float32)
    W = np.zeros((L, L), np.float32)
    for t in range(L):
        for k in range(kernel_size):
            src = min(max(t - half + k, 0), L - 1)
            W[src, t] += taps[k]
    return W


def _place(w, rows, cols, r0=0, c0=0):
    w = jnp.asarray(w, jnp.float32)
    out = jnp.zeros((rows, cols), jnp.float32)
    return out.at[r0:r0 + w.shape[0], c0:c0 + w.shape[1]].set(w)


def init_params(cfg):
    N = cfg["num_nodes"]
    L = cfg["input_len"]
    Cin = cfg["input_dim"]
    E = cfg["embed_dim"]
    Ttid, Tdiw, Nd = cfg["temp_dim_tid"], cfg["temp_dim_diw"], cfg["node_dim"]
    D = cfg["d_model"]                  # hidden_dim + input_len (= 80)
    C2 = cfg["hidden_dim"] + 2 * L      # (= 96)
    Lout = cfg["output_len"]
    nl = cfg["num_layer"]
    aux_dim = Ttid + Tdiw + Nd
    assert D + L <= CP and C2 <= CP and Lout <= CP
    assert Cin * L + L + aux_dim <= CP

    keys = iter(jax.random.split(jax.random.PRNGKey(42), 64))
    p = {}

    # embedding tables (gathered in the JAX wrapper: data-dependent indexing)
    p["time_in_day_emb"] = _xavier(next(keys), (cfg["time_of_day_size"], Ttid))
    p["day_in_week_emb"] = _xavier(next(keys), (cfg["day_of_week_size"], Tdiw))
    p["node_emb"] = _xavier(next(keys), (N, Nd))

    # hidden1 channel layout: [ ts(E) | tid | diw | node | seasonal(L) | trend(L) | pad ]
    off_sea = E + aux_dim
    off_raw_in = Cin * L                 # packed-input column where `raw` starts
    off_aux_in = Cin * L + L             # packed-input column where aux embeddings start

    # fused input projection: ts-emb conv, aux identity pass-through, seasonal/trend LD
    W_ld = jnp.asarray(_ld_matrix(L))
    w_in = jnp.zeros((CP, CP), jnp.float32)
    w_in = w_in.at[:Cin * L, :E].set(_xavier(next(keys), (Cin * L, E)))
    w_in = w_in.at[off_raw_in:off_raw_in + L, off_sea:off_sea + L].set(jnp.eye(L) - W_ld)
    w_in = w_in.at[off_raw_in:off_raw_in + L, D:D + L].set(W_ld)
    w_in = w_in.at[off_aux_in:off_aux_in + aux_dim, E:E + aux_dim].set(jnp.eye(aux_dim))

    # TemporalConvNet 2nd kernel tap (first tap only ever sees zero padding)
    w_tcn = _place(_xavier(next(keys), (D, D)), CP, CP)
    w_c = _place(_xavier(next(keys), (D, D)), CP, CP)
    w_glu3 = _place(_xavier(next(keys), (D, D)), CP, CP)
    mlp_ws = []
    for _ in range(nl):
        mlp_ws.append(_place(_xavier(next(keys), (C2, C2)), CP, CP))   # fc1
        mlp_ws.append(_place(_xavier(next(keys), (C2, C2)), CP, CP))   # fc2
    w_reg = _place(_xavier(next(keys), (C2, Lout)), CP, CP)

    # single-width weight slab (bf16): [w_in, w_tcn, w_c, w_glu3, mlp..., w_reg]
    p["w_sq"] = jnp.stack([w_in, w_tcn, w_c, w_glu3] + mlp_ws + [w_reg]
                          ).astype(jnp.bfloat16)

    # double-width (256-lane) weight slab: [Wq|Wv] and [Wglu1|Wglu2]
    def _dw(k1, k2):
        w = jnp.zeros((CP, 2 * CP), jnp.float32)
        w = w.at[:D, :D].set(_xavier(k1, (D, D)))
        return w.at[:D, CP:CP + D].set(_xavier(k2, (D, D)))
    w_qv = _dw(next(keys), next(keys))
    w_glu12 = _dw(next(keys), next(keys))
    p["w_dw"] = jnp.stack([w_qv, w_glu12]).astype(jnp.bfloat16)

    # bias slab (f32, one row per conv bias, PyTorch-style U(-1/sqrt(fan_in), .))
    def _b(key, fan_in, width, off=0):
        bound = 1.0 / math.sqrt(fan_in)
        vals = jax.random.uniform(key, (width,), jnp.float32, -bound, bound)
        return jnp.zeros((CP,), jnp.float32).at[off:off + width].set(vals)
    biases = [
        _b(next(keys), Cin * L, E),     # b_in   (ts-emb conv)
        _b(next(keys), 2 * D, D),       # b_tcn  (kernel (1,2))
        _b(next(keys), D, D),           # b_q
        _b(next(keys), D, D),           # b_v
        _b(next(keys), D, D),           # b_c
        _b(next(keys), D, D),           # b_glu1
        _b(next(keys), D, D),           # b_glu2
        _b(next(keys), D, D),           # b_glu3
    ]
    for _ in range(nl):
        biases.append(_b(next(keys), C2, C2))   # mlp fc1
        biases.append(_b(next(keys), C2, C2))   # mlp fc2
    biases.append(_b(next(keys), C2, Lout))     # b_reg
    p["b_all"] = jnp.stack(biases)

    # per-node constants slab [5, N, CP] (B-tiled to [5, B*N, CP] in the wrapper)
    memory = _xavier(next(keys), (N, D))
    key_sm = _place(jax.nn.softmax(memory / math.sqrt(D), axis=-1), N, CP)
    nodevec1 = jax.random.normal(next(keys), (N, 10), jnp.float32)
    nodevec2 = jax.random.normal(next(keys), (10, N), jnp.float32)
    weights_pool = _xavier(next(keys), (1, 3, 3))          # seq_length = 1
    bias_pool = _xavier(next(keys), (N, D))
    Aapt = jax.nn.softmax(jnp.maximum(nodevec1 @ nodevec2, 0.0), axis=-1)
    w_dyn = jnp.einsum("nm,dio->nio", Aapt, weights_pool)
    # einsum('bhlnc,nio->bhlnc', value, weights) == value * sum_{i,o} weights[n,i,o]
    s_full = jnp.broadcast_to(jnp.sum(w_dyn, axis=(1, 2))[:, None], (N, CP))
    dyn_bias = _place(Aapt @ bias_pool, N, CP)
    # torch affine weight is ones(d_model, num_nodes, 1), bias zeros; stored as
    # (weight + 1) so x*w + b + x becomes one FMA (orientation immaterial at ones-init).
    w_aff_p1 = _place(jnp.ones((N, D), jnp.float32), N, CP) + 1.0
    b_aff = jnp.zeros((N, CP), jnp.float32)
    p["node_slab"] = jnp.stack([key_sm, s_full, dyn_bias, w_aff_p1, b_aff])
    return p


# --------------------------------------------------------------------------
# Forward (thin JAX glue: gathers + packing, then one fused kernel call)
# --------------------------------------------------------------------------

def manet_forward(params, history_data, cfg):
    B, L, N, _ = history_data.shape
    Cin = cfg["input_dim"]
    BN = B * N

    input_data = history_data[..., :Cin]
    raw = jnp.transpose(history_data[..., 0], (0, 2, 1)).reshape(BN, L)       # [BN, L]
    ts_in = jnp.transpose(input_data, (0, 2, 1, 3)).reshape(BN, L * Cin)      # [BN, L*Cin]

    # temporal / node embedding gathers (data-dependent indexing -> plain JAX)
    tid_idx = (history_data[:, -1, :, 1] * cfg["time_of_day_size"]).astype(jnp.int32)
    diw_idx = history_data[:, -1, :, 2].astype(jnp.int32)
    tid_emb = params["time_in_day_emb"][tid_idx]                              # [B, N, Ttid]
    diw_emb = params["day_in_week_emb"][diw_idx]                              # [B, N, Tdiw]
    node_emb = jnp.broadcast_to(params["node_emb"][None],
                                (B, N, params["node_emb"].shape[-1]))
    aux = jnp.concatenate([tid_emb, diw_emb, node_emb], axis=-1).reshape(BN, -1)

    # one packed, lane-dense activation input: [ ts_in | raw | tid|diw|node | 0 pad ]
    packed = jnp.concatenate([ts_in, raw, aux], axis=-1)
    x_in = jnp.pad(packed, ((0, 0), (0, CP - packed.shape[1])))

    # B-tile the per-node constant slab so the kernel uses whole-block math
    node_slab = jnp.tile(params["node_slab"][:, None], (1, B, 1, 1)).reshape(5, BN, CP)

    kernel_inputs = (x_in, params["w_sq"], params["w_dw"], params["b_all"], node_slab)
    pred_p = manet_fused_call(kernel_inputs, B=B, N=N,
                              d_real=cfg["d_model"], num_layer=cfg["num_layer"])
    pred = pred_p[:, :cfg["output_len"]].reshape(B, N, cfg["output_len"])
    # PyTorch output layout [B, output_len, N, 1]
    return jnp.transpose(pred, (0, 2, 1))[..., None]


# --------------------------------------------------------------------------

if __name__ == "__main__":
    cfg = dict(num_nodes=8, node_dim=16, input_len=16, input_dim=3, embed_dim=32,
               output_len=12, num_layer=2, temp_dim_tid=8, temp_dim_diw=8,
               time_of_day_size=288, day_of_week_size=7)
    cfg["hidden_dim"] = (cfg["embed_dim"] + cfg["node_dim"]
                         + cfg["temp_dim_tid"] + cfg["temp_dim_diw"])
    cfg["d_model"] = cfg["hidden_dim"] + cfg["input_len"]

    B, L, N = 2, cfg["input_len"], cfg["num_nodes"]
    k1, k2, k3 = jax.random.split(jax.random.PRNGKey(0), 3)
    vals = jax.random.normal(k1, (B, L, N, 1), dtype=jnp.float32)
    tod = jax.random.uniform(k2, (B, L, N, 1), dtype=jnp.float32, minval=0.0, maxval=0.999)
    dow = jnp.floor(jax.random.uniform(k3, (B, L, N, 1), dtype=jnp.float32,
                                       minval=0.0, maxval=6.999))
    history_data = jnp.concatenate([vals, tod, dow], axis=-1)   # [B, L, N, 3]

    params = init_params(cfg)
    fwd = jax.jit(functools.partial(manet_forward, cfg=cfg))
    out = jax.block_until_ready(fwd(params, history_data))
    assert out.shape == (B, cfg["output_len"], N, 1), out.shape
    assert bool(jnp.all(jnp.isfinite(out)))
    print("KERNEL_OK")
</pallas_src>

<mosaic_0001>
module attributes {stable_mosaic.version = 11 : i64} {
  func.func @_manet_kernel(%arg0: i32, %arg1: memref<16x128xf32, #tpu.memory_space<vmem>>, %arg2: memref<9x128x128xbf16, #tpu.memory_space<vmem>>, %arg3: memref<2x128x256xbf16, #tpu.memory_space<vmem>>, %arg4: memref<13x128xf32, #tpu.memory_space<vmem>>, %arg5: memref<5x16x128xf32, #tpu.memory_space<vmem>>, %arg6: memref<16x128xf32, #tpu.memory_space<vmem>>) attributes {dimension_semantics = [#tpu.dimension_semantics<arbitrary>], iteration_bounds = array<i64: 1>, scalar_prefetch = 0 : i64, scratch_operands = 0 : i64, tpu.core_type = #tpu.core_type<tc>, window_params = [{pipeline_mode = #tpu.pipeline_mode<synchronous>, transform_indices = @transform_0, window_bounds = array<i64: 16, 128>}, {pipeline_mode = #tpu.pipeline_mode<synchronous>, transform_indices = @transform_1, window_bounds = array<i64: 9, 128, 128>}, {pipeline_mode = #tpu.pipeline_mode<synchronous>, transform_indices = @transform_2, window_bounds = array<i64: 2, 128, 256>}, {pipeline_mode = #tpu.pipeline_mode<synchronous>, transform_indices = @transform_3, window_bounds = array<i64: 13, 128>}, {pipeline_mode = #tpu.pipeline_mode<synchronous>, transform_indices = @transform_4, window_bounds = array<i64: 5, 16, 128>}, {pipeline_mode = #tpu.pipeline_mode<synchronous>, transform_indices = @transform_5, window_bounds = array<i64: 16, 128>}]} {
    %0 = tpu.iota {dimensions = array<i32: 1>} : vector<16x128xi32>
    %c80_i32 = arith.constant 80 : i32
    %1 = vector.broadcast %c80_i32 : i32 to vector<16x128xi32>
    %2 = arith.cmpi slt, %0, %1 : vector<16x128xi32>
    %3 = tpu.iota {dimensions = array<i32: 0>} : vector<16x16xi32>
    %4 = arith.sitofp %3 : vector<16x16xi32> to vector<16x16xf32>
    %5 = tpu.iota {dimensions = array<i32: 1>} : vector<16x16xi32>
    %6 = arith.sitofp %5 : vector<16x16xi32> to vector<16x16xf32>
    %cst = arith.constant 5.000000e-01 : f32
    %7 = vector.broadcast %cst : f32 to vector<16x16xf32>
    %8 = arith.addf %4, %7 : vector<16x16xf32>
    %cst_0 = arith.constant 1.250000e-01 : f32
    %9 = vector.broadcast %cst_0 : f32 to vector<16x16xf32>
    %10 = arith.mulf %8, %9 : vector<16x16xf32>
    %11 = math.floor %10 : vector<16x16xf32>
    %cst_1 = arith.constant 5.000000e-01 : f32
    %12 = vector.broadcast %cst_1 : f32 to vector<16x16xf32>
    %13 = arith.addf %6, %12 : vector<16x16xf32>
    %cst_2 = arith.constant 1.250000e-01 : f32
    %14 = vector.broadcast %cst_2 : f32 to vector<16x16xf32>
    %15 = arith.mulf %13, %14 : vector<16x16xf32>
    %16 = math.floor %15 : vector<16x16xf32>
    %17 = arith.cmpf oeq, %11, %16 : vector<16x16xf32>
    %18 = arith.extui %17 : vector<16x16xi1> to vector<16x16xi32>
    %19 = arith.sitofp %18 : vector<16x16xi32> to vector<16x16xf32>
    %c0 = arith.constant 0 : index
    %c0_3 = arith.constant 0 : index
    %20 = vector.load %arg1[%c0, %c0_3] : memref<16x128xf32, #tpu.memory_space<vmem>>, vector<16x128xf32>
    %c0_4 = arith.constant 0 : index
    %c0_5 = arith.constant 0 : index
    %c0_6 = arith.constant 0 : index
    %21 = vector.load %arg2[%c0_4, %c0_5, %c0_6] : memref<9x128x128xbf16, #tpu.memory_space<vmem>>, vector<1x128x128xbf16>
    %22 = vector.shape_cast %21 : vector<1x128x128xbf16> to vector<128x128xbf16>
    %23 = arith.truncf %20 : vector<16x128xf32> to vector<16x128xbf16>
    %cst_7 = arith.constant dense<0.000000e+00> : vector<16x128xf32>
    %24 = tpu.matmul %23, %22, %cst_7 {dimension_numbers = #tpu.dot_dimension_numbers<[1], [0], [0], [1], [0, 0, 1, 1], [], []>} : vector<16x128xbf16>, vector<128x128xbf16>, vector<16x128xf32> -> vector<16x128xf32>
    %c0_8 = arith.constant 0 : index
    %c0_9 = arith.constant 0 : index
    %25 = vector.load %arg4[%c0_8, %c0_9] : memref<13x128xf32, #tpu.memory_space<vmem>>, vector<1x128xf32>
    %26 = vector.broadcast %25 : vector<1x128xf32> to vector<16x128xf32>
    %27 = arith.addf %24, %26 : vector<16x128xf32>
    %c1 = arith.constant 1 : index
    %c0_10 = arith.constant 0 : index
    %c0_11 = arith.constant 0 : index
    %28 = vector.load %arg2[%c1, %c0_10, %c0_11] : memref<9x128x128xbf16, #tpu.memory_space<vmem>>, vector<1x128x128xbf16>
    %29 = vector.shape_cast %28 : vector<1x128x128xbf16> to vector<128x128xbf16>
    %30 = arith.truncf %27 : vector<16x128xf32> to vector<16x128xbf16>
    %cst_12 = arith.constant dense<0.000000e+00> : vector<16x128xf32>
    %31 = tpu.matmul %30, %29, %cst_12 {dimension_numbers = #tpu.dot_dimension_numbers<[1], [0], [0], [1], [0, 0, 1, 1], [], []>} : vector<16x128xbf16>, vector<128x128xbf16>, vector<16x128xf32> -> vector<16x128xf32>
    %c1_13 = arith.constant 1 : index
    %c0_14 = arith.constant 0 : index
    %32 = vector.load %arg4[%c1_13, %c0_14] : memref<13x128xf32, #tpu.memory_space<vmem>>, vector<1x128xf32>
    %33 = vector.broadcast %32 : vector<1x128xf32> to vector<16x128xf32>
    %34 = arith.addf %31, %33 : vector<16x128xf32>
    %cst_15 = arith.constant 0.000000e+00 : f32
    %35 = vector.broadcast %cst_15 : f32 to vector<16x128xf32>
    %36 = arith.maximumf %34, %35 : vector<16x128xf32>
    %37 = arith.addf %27, %36 : vector<16x128xf32>
    %c0_16 = arith.constant 0 : index
    %c0_17 = arith.constant 0 : index
    %c0_18 = arith.constant 0 : index
    %38 = vector.load %arg3[%c0_16, %c0_17, %c0_18] : memref<2x128x256xbf16, #tpu.memory_space<vmem>>, vector<1x128x256xbf16>
    %39 = vector.shape_cast %38 : vector<1x128x256xbf16> to vector<128x256xbf16>
    %40 = arith.truncf %37 : vector<16x128xf32> to vector<16x128xbf16>
    %cst_19 = arith.constant dense<0.000000e+00> : vector<16x256xf32>
    %41 = tpu.matmul %40, %39, %cst_19 {dimension_numbers = #tpu.dot_dimension_numbers<[1], [0], [0], [1], [0, 0, 1, 1], [], []>} : vector<16x128xbf16>, vector<128x256xbf16>, vector<16x256xf32> -> vector<16x256xf32>
    %42 = vector.extract_strided_slice %41 {offsets = [0, 0], sizes = [16, 128], strides = [1, 1]} : vector<16x256xf32> to vector<16x128xf32>
    %c2 = arith.constant 2 : index
    %c0_20 = arith.constant 0 : index
    %43 = vector.load %arg4[%c2, %c0_20] : memref<13x128xf32, #tpu.memory_space<vmem>>, vector<1x128xf32>
    %44 = vector.broadcast %43 : vector<1x128xf32> to vector<16x128xf32>
    %45 = arith.addf %42, %44 : vector<16x128xf32>
    %cst_21 = arith.constant 0.000000e+00 : f32
    %46 = vector.broadcast %cst_21 : f32 to vector<16x128xf32>
    %47 = arith.maximumf %45, %46 : vector<16x128xf32>
    %48 = vector.extract_strided_slice %41 {offsets = [0, 128], sizes = [16, 128], strides = [1, 1]} : vector<16x256xf32> to vector<16x128xf32>
    %c3 = arith.constant 3 : index
    %c0_22 = arith.constant 0 : index
    %49 = vector.load %arg4[%c3, %c0_22] : memref<13x128xf32, #tpu.memory_space<vmem>>, vector<1x128xf32>
    %50 = vector.broadcast %49 : vector<1x128xf32> to vector<16x128xf32>
    %51 = arith.addf %48, %50 : vector<16x128xf32>
    %cst_23 = arith.constant 0.000000e+00 : f32
    %52 = vector.broadcast %cst_23 : f32 to vector<16x128xf32>
    %53 = arith.maximumf %51, %52 : vector<16x128xf32>
    %cst_24 = arith.constant 0.111803398 : f32
    %54 = vector.broadcast %cst_24 : f32 to vector<16x128xf32>
    %55 = arith.mulf %47, %54 : vector<16x128xf32>
    %cst_25 = arith.constant -1.000000e+30 : f32
    %56 = vector.broadcast %cst_25 : f32 to vector<16x128xf32>
    %57 = arith.select %2, %55, %56 : vector<16x128xi1>, vector<16x128xf32>
    %cst_26 = arith.constant dense<0xFF800000> : vector<16xf32>
    %58 = vector.multi_reduction <maximumf>, %57, %cst_26 [1] : vector<16x128xf32> to vector<16xf32>
    %59 = vector.shape_cast %58 : vector<16xf32> to vector<16x1xf32>
    %60 = vector.broadcast %59 : vector<16x1xf32> to vector<16x128xf32>
    %61 = arith.subf %57, %60 : vector<16x128xf32>
    %62 = math.exp %61 : vector<16x128xf32>
    %cst_27 = arith.constant dense<0.000000e+00> : vector<16xf32>
    %63 = vector.multi_reduction <add>, %62, %cst_27 [1] : vector<16x128xf32> to vector<16xf32>
    %64 = vector.shape_cast %63 : vector<16xf32> to vector<16x1xf32>
    %65 = vector.broadcast %64 : vector<16x1xf32> to vector<16x128xf32>
    %66 = arith.divf %62, %65 : vector<16x128xf32>
    %c0_28 = arith.constant 0 : index
    %c0_29 = arith.constant 0 : index
    %c0_30 = arith.constant 0 : index
    %67 = vector.load %arg5[%c0_28, %c0_29, %c0_30] : memref<5x16x128xf32, #tpu.memory_space<vmem>>, vector<1x16x128xf32>
    %68 = vector.shape_cast %67 : vector<1x16x128xf32> to vector<16x128xf32>
    %c1_31 = arith.constant 1 : index
    %c0_32 = arith.constant 0 : index
    %c0_33 = arith.constant 0 : index
    %69 = vector.load %arg5[%c1_31, %c0_32, %c0_33] : memref<5x16x128xf32, #tpu.memory_space<vmem>>, vector<1x16x128xf32>
    %70 = vector.shape_cast %69 : vector<1x16x128xf32> to vector<16x128xf32>
    %c2_34 = arith.constant 2 : index
    %c0_35 = arith.constant 0 : index
    %c0_36 = arith.constant 0 : index
    %71 = vector.load %arg5[%c2_34, %c0_35, %c0_36] : memref<5x16x128xf32, #tpu.memory_space<vmem>>, vector<1x16x128xf32>
    %72 = vector.shape_cast %71 : vector<1x16x128xf32> to vector<16x128xf32>
    %c3_37 = arith.constant 3 : index
    %c0_38 = arith.constant 0 : index
    %c0_39 = arith.constant 0 : index
    %73 = vector.load %arg5[%c3_37, %c0_38, %c0_39] : memref<5x16x128xf32, #tpu.memory_space<vmem>>, vector<1x16x128xf32>
    %74 = vector.shape_cast %73 : vector<1x16x128xf32> to vector<16x128xf32>
    %c4 = arith.constant 4 : index
    %c0_40 = arith.constant 0 : index
    %c0_41 = arith.constant 0 : index
    %75 = vector.load %arg5[%c4, %c0_40, %c0_41] : memref<5x16x128xf32, #tpu.memory_space<vmem>>, vector<1x16x128xf32>
    %76 = vector.shape_cast %75 : vector<1x16x128xf32> to vector<16x128xf32>
    %cst_42 = arith.constant dense<0.000000e+00> : vector<16x16xf32>
    %77 = tpu.matmul %66, %68, %cst_42 {dimension_numbers = #tpu.dot_dimension_numbers<[1], [1], [0], [0], [0, 0, 1, 0], [], []>} : vector<16x128xf32>, vector<16x128xf32>, vector<16x16xf32> -> vector<16x16xf32>
    %78 = arith.mulf %77, %19 : vector<16x16xf32>
    %cst_43 = arith.constant dense<0.000000e+00> : vector<16x128xf32>
    %79 = tpu.matmul %78, %53, %cst_43 {dimension_numbers = #tpu.dot_dimension_numbers<[1], [0], [0], [1], [0, 0, 1, 1], [], []>} : vector<16x16xf32>, vector<16x128xf32>, vector<16x128xf32> -> vector<16x128xf32>
    %80 = arith.mulf %53, %70 : vector<16x128xf32>
    %81 = arith.addf %79, %80 : vector<16x128xf32>
    %82 = arith.addf %81, %72 : vector<16x128xf32>
    %c2_44 = arith.constant 2 : index
    %c0_45 = arith.constant 0 : index
    %c0_46 = arith.constant 0 : index
    %83 = vector.load %arg2[%c2_44, %c0_45, %c0_46] : memref<9x128x128xbf16, #tpu.memory_space<vmem>>, vector<1x128x128xbf16>
    %84 = vector.shape_cast %83 : vector<1x128x128xbf16> to vector<128x128xbf16>
    %85 = arith.truncf %82 : vector<16x128xf32> to vector<16x128xbf16>
    %cst_47 = arith.constant dense<0.000000e+00> : vector<16x128xf32>
    %86 = tpu.matmul %85, %84, %cst_47 {dimension_numbers = #tpu.dot_dimension_numbers<[1], [0], [0], [1], [0, 0, 1, 1], [], []>} : vector<16x128xbf16>, vector<128x128xbf16>, vector<16x128xf32> -> vector<16x128xf32>
    %c4_48 = arith.constant 4 : index
    %c0_49 = arith.constant 0 : index
    %87 = vector.load %arg4[%c4_48, %c0_49] : memref<13x128xf32, #tpu.memory_space<vmem>>, vector<1x128xf32>
    %88 = vector.broadcast %87 : vector<1x128xf32> to vector<16x128xf32>
    %89 = arith.addf %86, %88 : vector<16x128xf32>
    %cst_50 = arith.constant 0.000000e+00 : f32
    %90 = vector.broadcast %cst_50 : f32 to vector<16x128xf32>
    %91 = arith.maximumf %89, %90 : vector<16x128xf32>
    %92 = arith.mulf %91, %74 : vector<16x128xf32>
    %93 = arith.addf %92, %76 : vector<16x128xf32>
    %94 = arith.addf %93, %37 : vector<16x128xf32>
    %cst_51 = arith.constant 0.000000e+00 : f32
    %95 = vector.broadcast %cst_51 : f32 to vector<16x128xf32>
    %96 = arith.select %2, %94, %95 : vector<16x128xi1>, vector<16x128xf32>
    %cst_52 = arith.constant dense<0.000000e+00> : vector<16x128xf32>
    %97 = tpu.matmul %19, %96, %cst_52 {dimension_numbers = #tpu.dot_dimension_numbers<[1], [0], [0], [1], [0, 0, 1, 1], [], []>} : vector<16x16xf32>, vector<16x128xf32>, vector<16x128xf32> -> vector<16x128xf32>
    %cst_53 = arith.constant dense<0.000000e+00> : vector<16xf32>
    %98 = vector.multi_reduction <add>, %97, %cst_53 [1] : vector<16x128xf32> to vector<16xf32>
    %99 = vector.shape_cast %98 : vector<16xf32> to vector<16x1xf32>
    %cst_54 = arith.constant 1.562500e-03 : f32
    %100 = vector.broadcast %cst_54 : f32 to vector<16x1xf32>
    %101 = arith.mulf %99, %100 : vector<16x1xf32>
    %102 = vector.broadcast %101 : vector<16x1xf32> to vector<16x128xf32>
    %103 = arith.subf %94, %102 : vector<16x128xf32>
    %cst_55 = arith.constant 0.000000e+00 : f32
    %104 = vector.broadcast %cst_55 : f32 to vector<16x128xf32>
    %105 = arith.select %2, %103, %104 : vector<16x128xi1>, vector<16x128xf32>
    %106 = arith.mulf %105, %105 : vector<16x128xf32>
    %cst_56 = arith.constant dense<0.000000e+00> : vector<16x128xf32>
    %107 = tpu.matmul %19, %106, %cst_56 {dimension_numbers = #tpu.dot_dimension_numbers<[1], [0], [0], [1], [0, 0, 1, 1], [], []>} : vector<16x16xf32>, vector<16x128xf32>, vector<16x128xf32> -> vector<16x128xf32>
    %cst_57 = arith.constant dense<0.000000e+00> : vector<16xf32>
    %108 = vector.multi_reduction <add>, %107, %cst_57 [1] : vector<16x128xf32> to vector<16xf32>
    %109 = vector.shape_cast %108 : vector<16xf32> to vector<16x1xf32>
    %cst_58 = arith.constant 1.562500e-03 : f32
    %110 = vector.broadcast %cst_58 : f32 to vector<16x1xf32>
    %111 = arith.mulf %109, %110 : vector<16x1xf32>
    %cst_59 = arith.constant 9.99999974E-6 : f32
    %112 = vector.broadcast %cst_59 : f32 to vector<16x1xf32>
    %113 = arith.addf %111, %112 : vector<16x1xf32>
    %114 = math.rsqrt %113 : vector<16x1xf32>
    %115 = vector.broadcast %114 : vector<16x1xf32> to vector<16x128xf32>
    %116 = arith.mulf %105, %115 : vector<16x128xf32>
    %c1_60 = arith.constant 1 : index
    %c0_61 = arith.constant 0 : index
    %c0_62 = arith.constant 0 : index
    %117 = vector.load %arg3[%c1_60, %c0_61, %c0_62] : memref<2x128x256xbf16, #tpu.memory_space<vmem>>, vector<1x128x256xbf16>
    %118 = vector.shape_cast %117 : vector<1x128x256xbf16> to vector<128x256xbf16>
    %119 = arith.truncf %116 : vector<16x128xf32> to vector<16x128xbf16>
    %cst_63 = arith.constant dense<0.000000e+00> : vector<16x256xf32>
    %120 = tpu.matmul %119, %118, %cst_63 {dimension_numbers = #tpu.dot_dimension_numbers<[1], [0], [0], [1], [0, 0, 1, 1], [], []>} : vector<16x128xbf16>, vector<128x256xbf16>, vector<16x256xf32> -> vector<16x256xf32>
    %121 = vector.extract_strided_slice %120 {offsets = [0, 0], sizes = [16, 128], strides = [1, 1]} : vector<16x256xf32> to vector<16x128xf32>
    %c5 = arith.constant 5 : index
    %c0_64 = arith.constant 0 : index
    %122 = vector.load %arg4[%c5, %c0_64] : memref<13x128xf32, #tpu.memory_space<vmem>>, vector<1x128xf32>
    %123 = vector.broadcast %122 : vector<1x128xf32> to vector<16x128xf32>
    %124 = arith.addf %121, %123 : vector<16x128xf32>
    %125 = vector.extract_strided_slice %120 {offsets = [0, 128], sizes = [16, 128], strides = [1, 1]} : vector<16x256xf32> to vector<16x128xf32>
    %c6 = arith.constant 6 : index
    %c0_65 = arith.constant 0 : index
    %126 = vector.load %arg4[%c6, %c0_65] : memref<13x128xf32, #tpu.memory_space<vmem>>, vector<1x128xf32>
    %127 = vector.broadcast %126 : vector<1x128xf32> to vector<16x128xf32>
    %128 = arith.addf %125, %127 : vector<16x128xf32>
    %cst_66 = arith.constant 5.000000e-01 : f32
    %129 = vector.broadcast %cst_66 : f32 to vector<16x128xf32>
    %130 = arith.mulf %129, %128 : vector<16x128xf32>
    %131 = math.tanh %130 : vector<16x128xf32>
    %cst_67 = arith.constant 1.000000e+00 : f32
    %132 = vector.broadcast %cst_67 : f32 to vector<16x128xf32>
    %133 = arith.addf %131, %132 : vector<16x128xf32>
    %cst_68 = arith.constant 5.000000e-01 : f32
    %134 = vector.broadcast %cst_68 : f32 to vector<16x128xf32>
    %135 = arith.mulf %134, %133 : vector<16x128xf32>
    %136 = arith.mulf %124, %135 : vector<16x128xf32>
    %c3_69 = arith.constant 3 : index
    %c0_70 = arith.constant 0 : index
    %c0_71 = arith.constant 0 : index
    %137 = vector.load %arg2[%c3_69, %c0_70, %c0_71] : memref<9x128x128xbf16, #tpu.memory_space<vmem>>, vector<1x128x128xbf16>
    %138 = vector.shape_cast %137 : vector<1x128x128xbf16> to vector<128x128xbf16>
    %139 = arith.truncf %136 : vector<16x128xf32> to vector<16x128xbf16>
    %cst_72 = arith.constant dense<0.000000e+00> : vector<16x128xf32>
    %140 = tpu.matmul %139, %138, %cst_72 {dimension_numbers = #tpu.dot_dimension_numbers<[1], [0], [0], [1], [0, 0, 1, 1], [], []>} : vector<16x128xbf16>, vector<128x128xbf16>, vector<16x128xf32> -> vector<16x128xf32>
    %c7 = arith.constant 7 : index
    %c0_73 = arith.constant 0 : index
    %141 = vector.load %arg4[%c7, %c0_73] : memref<13x128xf32, #tpu.memory_space<vmem>>, vector<1x128xf32>
    %142 = vector.broadcast %141 : vector<1x128xf32> to vector<16x128xf32>
    %143 = arith.addf %140, %142 : vector<16x128xf32>
    %144 = arith.addf %143, %116 : vector<16x128xf32>
    %145 = arith.mulf %144, %74 : vector<16x128xf32>
    %146 = arith.addf %145, %76 : vector<16x128xf32>
    %cst_74 = arith.constant 0.000000e+00 : f32
    %147 = vector.broadcast %cst_74 : f32 to vector<16x128xf32>
    %148 = arith.select %2, %146, %147 : vector<16x128xi1>, vector<16x128xf32>
    %cst_75 = arith.constant dense<0.000000e+00> : vector<16x128xf32>
    %149 = tpu.matmul %19, %148, %cst_75 {dimension_numbers = #tpu.dot_dimension_numbers<[1], [0], [0], [1], [0, 0, 1, 1], [], []>} : vector<16x16xf32>, vector<16x128xf32>, vector<16x128xf32> -> vector<16x128xf32>
    %cst_76 = arith.constant dense<0.000000e+00> : vector<16xf32>
    %150 = vector.multi_reduction <add>, %149, %cst_76 [1] : vector<16x128xf32> to vector<16xf32>
    %151 = vector.shape_cast %150 : vector<16xf32> to vector<16x1xf32>
    %cst_77 = arith.constant 1.562500e-03 : f32
    %152 = vector.broadcast %cst_77 : f32 to vector<16x1xf32>
    %153 = arith.mulf %151, %152 : vector<16x1xf32>
    %154 = vector.broadcast %153 : vector<16x1xf32> to vector<16x128xf32>
    %155 = arith.subf %146, %154 : vector<16x128xf32>
    %cst_78 = arith.constant 0.000000e+00 : f32
    %156 = vector.broadcast %cst_78 : f32 to vector<16x128xf32>
    %157 = arith.select %2, %155, %156 : vector<16x128xi1>, vector<16x128xf32>
    %158 = arith.mulf %157, %157 : vector<16x128xf32>
    %cst_79 = arith.constant dense<0.000000e+00> : vector<16x128xf32>
    %159 = tpu.matmul %19, %158, %cst_79 {dimension_numbers = #tpu.dot_dimension_numbers<[1], [0], [0], [1], [0, 0, 1, 1], [], []>} : vector<16x16xf32>, vector<16x128xf32>, vector<16x128xf32> -> vector<16x128xf32>
    %cst_80 = arith.constant dense<0.000000e+00> : vector<16xf32>
    %160 = vector.multi_reduction <add>, %159, %cst_80 [1] : vector<16x128xf32> to vector<16xf32>
    %161 = vector.shape_cast %160 : vector<16xf32> to vector<16x1xf32>
    %cst_81 = arith.constant 1.562500e-03 : f32
    %162 = vector.broadcast %cst_81 : f32 to vector<16x1xf32>
    %163 = arith.mulf %161, %162 : vector<16x1xf32>
    %cst_82 = arith.constant 9.99999974E-6 : f32
    %164 = vector.broadcast %cst_82 : f32 to vector<16x1xf32>
    %165 = arith.addf %163, %164 : vector<16x1xf32>
    %166 = math.rsqrt %165 : vector<16x1xf32>
    %167 = vector.broadcast %166 : vector<16x1xf32> to vector<16x128xf32>
    %168 = arith.mulf %157, %167 : vector<16x128xf32>
    %169 = arith.addf %37, %168 : vector<16x128xf32>
    %c4_83 = arith.constant 4 : index
    %c0_84 = arith.constant 0 : index
    %c0_85 = arith.constant 0 : index
    %170 = vector.load %arg2[%c4_83, %c0_84, %c0_85] : memref<9x128x128xbf16, #tpu.memory_space<vmem>>, vector<1x128x128xbf16>
    %171 = vector.shape_cast %170 : vector<1x128x128xbf16> to vector<128x128xbf16>
    %172 = arith.truncf %169 : vector<16x128xf32> to vector<16x128xbf16>
    %cst_86 = arith.constant dense<0.000000e+00> : vector<16x128xf32>
    %173 = tpu.matmul %172, %171, %cst_86 {dimension_numbers = #tpu.dot_dimension_numbers<[1], [0], [0], [1], [0, 0, 1, 1], [], []>} : vector<16x128xbf16>, vector<128x128xbf16>, vector<16x128xf32> -> vector<16x128xf32>
    %c8 = arith.constant 8 : index
    %c0_87 = arith.constant 0 : index
    %174 = vector.load %arg4[%c8, %c0_87] : memref<13x128xf32, #tpu.memory_space<vmem>>, vector<1x128xf32>
    %175 = vector.broadcast %174 : vector<1x128xf32> to vector<16x128xf32>
    %176 = arith.addf %173, %175 : vector<16x128xf32>
    %cst_88 = arith.constant 0.000000e+00 : f32
    %177 = vector.broadcast %cst_88 : f32 to vector<16x128xf32>
    %178 = arith.maximumf %176, %177 : vector<16x128xf32>
    %c5_89 = arith.constant 5 : index
    %c0_90 = arith.constant 0 : index
    %c0_91 = arith.constant 0 : index
    %179 = vector.load %arg2[%c5_89, %c0_90, %c0_91] : memref<9x128x128xbf16, #tpu.memory_space<vmem>>, vector<1x128x128xbf16>
    %180 = vector.shape_cast %179 : vector<1x128x128xbf16> to vector<128x128xbf16>
    %181 = arith.truncf %178 : vector<16x128xf32> to vector<16x128xbf16>
    %cst_92 = arith.constant dense<0.000000e+00> : vector<16x128xf32>
    %182 = tpu.matmul %181, %180, %cst_92 {dimension_numbers = #tpu.dot_dimension_numbers<[1], [0], [0], [1], [0, 0, 1, 1], [], []>} : vector<16x128xbf16>, vector<128x128xbf16>, vector<16x128xf32> -> vector<16x128xf32>
    %c9 = arith.constant 9 : index
    %c0_93 = arith.constant 0 : index
    %183 = vector.load %arg4[%c9, %c0_93] : memref<13x128xf32, #tpu.memory_space<vmem>>, vector<1x128xf32>
    %184 = vector.broadcast %183 : vector<1x128xf32> to vector<16x128xf32>
    %185 = arith.addf %182, %184 : vector<16x128xf32>
    %186 = arith.addf %169, %185 : vector<16x128xf32>
    %c6_94 = arith.constant 6 : index
    %c0_95 = arith.constant 0 : index
    %c0_96 = arith.constant 0 : index
    %187 = vector.load %arg2[%c6_94, %c0_95, %c0_96] : memref<9x128x128xbf16, #tpu.memory_space<vmem>>, vector<1x128x128xbf16>
    %188 = vector.shape_cast %187 : vector<1x128x128xbf16> to vector<128x128xbf16>
    %189 = arith.truncf %186 : vector<16x128xf32> to vector<16x128xbf16>
    %cst_97 = arith.constant dense<0.000000e+00> : vector<16x128xf32>
    %190 = tpu.matmul %189, %188, %cst_97 {dimension_numbers = #tpu.dot_dimension_numbers<[1], [0], [0], [1], [0, 0, 1, 1], [], []>} : vector<16x128xbf16>, vector<128x128xbf16>, vector<16x128xf32> -> vector<16x128xf32>
    %c10 = arith.constant 10 : index
    %c0_98 = arith.constant 0 : index
    %191 = vector.load %arg4[%c10, %c0_98] : memref<13x128xf32, #tpu.memory_space<vmem>>, vector<1x128xf32>
    %192 = vector.broadcast %191 : vector<1x128xf32> to vector<16x128xf32>
    %193 = arith.addf %190, %192 : vector<16x128xf32>
    %cst_99 = arith.constant 0.000000e+00 : f32
    %194 = vector.broadcast %cst_99 : f32 to vector<16x128xf32>
    %195 = arith.maximumf %193, %194 : vector<16x128xf32>
    %c7_100 = arith.constant 7 : index
    %c0_101 = arith.constant 0 : index
    %c0_102 = arith.constant 0 : index
    %196 = vector.load %arg2[%c7_100, %c0_101, %c0_102] : memref<9x128x128xbf16, #tpu.memory_space<vmem>>, vector<1x128x128xbf16>
    %197 = vector.shape_cast %196 : vector<1x128x128xbf16> to vector<128x128xbf16>
    %198 = arith.truncf %195 : vector<16x128xf32> to vector<16x128xbf16>
    %cst_103 = arith.constant dense<0.000000e+00> : vector<16x128xf32>
    %199 = tpu.matmul %198, %197, %cst_103 {dimension_numbers = #tpu.dot_dimension_numbers<[1], [0], [0], [1], [0, 0, 1, 1], [], []>} : vector<16x128xbf16>, vector<128x128xbf16>, vector<16x128xf32> -> vector<16x128xf32>
    %c11 = arith.constant 11 : index
    %c0_104 = arith.constant 0 : index
    %200 = vector.load %arg4[%c11, %c0_104] : memref<13x128xf32, #tpu.memory_space<vmem>>, vector<1x128xf32>
    %201 = vector.broadcast %200 : vector<1x128xf32> to vector<16x128xf32>
    %202 = arith.addf %199, %201 : vector<16x128xf32>
    %203 = arith.addf %186, %202 : vector<16x128xf32>
    %c8_105 = arith.constant 8 : index
    %c0_106 = arith.constant 0 : index
    %c0_107 = arith.constant 0 : index
    %204 = vector.load %arg2[%c8_105, %c0_106, %c0_107] : memref<9x128x128xbf16, #tpu.memory_space<vmem>>, vector<1x128x128xbf16>
    %205 = vector.shape_cast %204 : vector<1x128x128xbf16> to vector<128x128xbf16>
    %206 = arith.truncf %203 : vector<16x128xf32> to vector<16x128xbf16>
    %cst_108 = arith.constant dense<0.000000e+00> : vector<16x128xf32>
    %207 = tpu.matmul %206, %205, %cst_108 {dimension_numbers = #tpu.dot_dimension_numbers<[1], [0], [0], [1], [0, 0, 1, 1], [], []>} : vector<16x128xbf16>, vector<128x128xbf16>, vector<16x128xf32> -> vector<16x128xf32>
    %c12 = arith.constant 12 : index
    %c0_109 = arith.constant 0 : index
    %208 = vector.load %arg4[%c12, %c0_109] : memref<13x128xf32, #tpu.memory_space<vmem>>, vector<1x128xf32>
    %209 = vector.broadcast %208 : vector<1x128xf32> to vector<16x128xf32>
    %210 = arith.addf %207, %209 : vector<16x128xf32>
    %c0_110 = arith.constant 0 : index
    %c0_111 = arith.constant 0 : index
    %211 = vector.load %arg6[%c0_110, %c0_111] : memref<16x128xf32, #tpu.memory_space<vmem>>, vector<16x128xf32>
    tpu.vector_store %arg6[%c0_110, %c0_111], %210 {strides = array<i32>} : memref<16x128xf32, #tpu.memory_space<vmem>>, vector<16x128xf32>,
    return
  }
  func.func @transform_0(%arg0: i32) -> (i32, i32) {
    %c0_i32 = arith.constant 0 : i32
    %c0_i32_0 = arith.constant 0 : i32
    %c0_i32_1 = arith.constant 0 : i32
    return %c0_i32, %c0_i32_0 : i32, i32
  }
  func.func @transform_1(%arg0: i32) -> (i32, i32, i32) {
    %c0_i32 = arith.constant 0 : i32
    %c0_i32_0 = arith.constant 0 : i32
    %c0_i32_1 = arith.constant 0 : i32
    %c0_i32_2 = arith.constant 0 : i32
    return %c0_i32, %c0_i32_0, %c0_i32_1 : i32, i32, i32
  }
  func.func @transform_2(%arg0: i32) -> (i32, i32, i32) {
    %c0_i32 = arith.constant 0 : i32
    %c0_i32_0 = arith.constant 0 : i32
    %c0_i32_1 = arith.constant 0 : i32
    %c0_i32_2 = arith.constant 0 : i32
    return %c0_i32, %c0_i32_0, %c0_i32_1 : i32, i32, i32
  }
  func.func @transform_3(%arg0: i32) -> (i32, i32) {
    %c0_i32 = arith.constant 0 : i32
    %c0_i32_0 = arith.constant 0 : i32
    %c0_i32_1 = arith.constant 0 : i32
    return %c0_i32, %c0_i32_0 : i32, i32
  }
  func.func @transform_4(%arg0: i32) -> (i32, i32, i32) {
    %c0_i32 = arith.constant 0 : i32
    %c0_i32_0 = arith.constant 0 : i32
    %c0_i32_1 = arith.constant 0 : i32
    %c0_i32_2 = arith.constant 0 : i32
    return %c0_i32, %c0_i32_0, %c0_i32_1 : i32, i32, i32
  }
  func.func @transform_5(%arg0: i32) -> (i32, i32) {
    %c0_i32 = arith.constant 0 : i32
    %c0_i32_0 = arith.constant 0 : i32
    %c0_i32_1 = arith.constant 0 : i32
    return %c0_i32, %c0_i32_0 : i32, i32
  }
}

</mosaic_0001>

<bundles_post_ra>
// kernel: manet_forward.1
= control target key start
LH: loop header
LB: loop body
LE: loop exit
PB: predicated region body
PF: predicated region fallthrough
CT: control target
= control target key end

     0   :  { %v2791_v1 = vmov 0.0   ;;  %vm2792_vm0 = vmmov 0   ;;  %s3431_s0 = inlined_call_operand.vmem [shape: f32[16,128], index: 0, kind: input, shape index: {}]   ;;  %s3432_s1 = inlined_call_operand.vmem [shape: bf16[9,128,128], index: 1, kind: input, shape index: {}]   ;;  %s3433_s2 = inlined_call_operand.vmem [shape: bf16[2,128,256], index: 2, kind: input, shape index: {}]   ;;  %s3434_s3 = inlined_call_operand.vmem [shape: f32[13,128], index: 3, kind: input, shape index: {}]   ;;  %s3435_s4 = inlined_call_operand.vmem [shape: f32[5,16,128], index: 4, kind: input, shape index: {}]   ;;  %s3436_s5 = inlined_call_operand.hbm [shape: f32[16,128], index: 5, kind: output, shape index: {}]  }
   0x1   :  { %v2627_v0 = vld [vmem:[%s3432_s1] sm:$0xff]   ;;  %2371 = vmatprep.subr.bf16.mxu0 %v2791_v1  ;;  %2391 = vmatprep.subr.bf16.mxu1 %v2791_v1  ;;  %v2628_v2 = vld [vmem:[%s3432_s1 + $0x8] sm:$0xff]   ;;  %v2629_v3 = vld [vmem:[%s3432_s1 + $0x10] sm:$0xff]  }
   0x2   :  { %2372 = vmatpush3.bf16.msra.mxu0 %v2627_v0  ;;  %2387 = vmatprep.mubr.msk.bf16.mxu0 %vm2792_vm0, %v2791_v1  ;;  %v2635_v4 = vld [vmem:[%s3432_s1 + $0x40] sm:$0xff]   ;;  %v2630_v5 = vld [vmem:[%s3432_s1 + $0x18] sm:$0xff]   ;;  %v2636_v6 = vld [vmem:[%s3432_s1 + $0x48] sm:$0xff]  }
   0x3   :  { %2373 = vmatprep.subr.bf16.mxu0 %v2791_v1  ;;  %2407 = vmatprep.mubr.msk.bf16.mxu1 %vm2792_vm0, %v2791_v1  ;;  %v2631_v7 = vld [vmem:[%s3432_s1 + $0x20] sm:$0xff]   ;;  %v2637_v8 = vld [vmem:[%s3432_s1 + $0x50] sm:$0xff]   ;;  %v2632_v9 = vld [vmem:[%s3432_s1 + $0x28] sm:$0xff]  }
   0x4   :  { %2392 = vmatpush3.bf16.msra.mxu1 %v2635_v4  ;;  %v2638_v10 = vld [vmem:[%s3432_s1 + $0x58] sm:$0xff]   ;;  %v2633_v11 = vld [vmem:[%s3432_s1 + $0x30] sm:$0xff]   ;;  %v2639_v12 = vld [vmem:[%s3432_s1 + $0x60] sm:$0xff]  }
   0x5   :  { %2393 = vmatprep.subr.bf16.mxu1 %v2791_v1  ;;  %v2634_v13 = vld [vmem:[%s3432_s1 + $0x38] sm:$0xff]   ;;  %v46_v14 = vld [vmem:[%s3431_s0] sm:$0xff]  ;;  %v47_v15 = vld [vmem:[%s3431_s0 + $0x8] sm:$0xff] }
   0x6   :  { %2374 = vmatpush3.bf16.msra.mxu0 %v2628_v2  ;;  %v2640_v16 = vld [vmem:[%s3432_s1 + $0x68] sm:$0xff]   ;;  %v64_v17 = vpack.c.bf16 %v47_v15, %v46_v14 }
   0x7   :  { %2375 = vmatprep.subr.bf16.mxu0 %v2791_v1 }
   0x8   :  { %2394 = vmatpush3.bf16.msra.mxu1 %v2636_v6 }
   0x9   :  { %2395 = vmatprep.subr.bf16.mxu1 %v2791_v1 }
   0xa   :  { %2376 = vmatpush3.bf16.msra.mxu0 %v2629_v3 }
   0xb   :  { %2377 = vmatprep.subr.bf16.mxu0 %v2791_v1 }
   0xc   :  { %2396 = vmatpush3.bf16.msra.mxu1 %v2637_v8 }
   0xd   :  { %2397 = vmatprep.subr.bf16.mxu1 %v2791_v1 }
   0xe   :  { %2378 = vmatpush3.bf16.msra.mxu0 %v2630_v5 }
   0xf   :  { %2379 = vmatprep.subr.bf16.mxu0 %v2791_v1 }
  0x10   :  { %2398 = vmatpush3.bf16.msra.mxu1 %v2638_v10 }
  0x11   :  { %2399 = vmatprep.subr.bf16.mxu1 %v2791_v1 }
  0x12   :  { %2380 = vmatpush3.bf16.msra.mxu0 %v2631_v7 }
  0x13   :  { %2381 = vmatprep.subr.bf16.mxu0 %v2791_v1 }
  0x14   :  { %2400 = vmatpush3.bf16.msra.mxu1 %v2639_v12 }
  0x15   :  { %2401 = vmatprep.subr.bf16.mxu1 %v2791_v1 }
  0x16   :  { %2382 = vmatpush3.bf16.msra.mxu0 %v2632_v9 }
  0x17   :  { %2383 = vmatprep.subr.bf16.mxu0 %v2791_v1 }
  0x18   :  { %2402 = vmatpush3.bf16.msra.mxu1 %v2640_v16 }
  0x19   :  { %2403 = vmatprep.subr.bf16.mxu1 %v2791_v1 }
  0x1a   :  { %2384 = vmatpush3.bf16.msra.mxu0 %v2633_v11 }
  0x1b   :  { %2385 = vmatprep.subr.bf16.mxu0 %v2791_v1 }
  0x1e   :  { %2386 = vmatpush3.bf16.msra.mxu0 %v2634_v13 }
  0x21   :  { %2388 = vmatmul.mubr.bf16.vlgmr.msra.gmra.mrb[0].mxu0 %v64_v17 }
  0x22   :  { %10 = vsyncpa [#allocation3], 0  ;;  %v2641_v18 = vld [vmem:[%s3432_s1 + $0x70] sm:$0xff]   ;;  %v2642_v19 = vld [vmem:[%s3432_s1 + $0x78] sm:$0xff]   ;;  %v2793_v44 = vmov 0   ;;  %v22_v60 = vlaneseq  ;;  %vm548_vm4 = vcmask 130048  }
  0x23   :  { %2404 = vmatpush3.bf16.msra.mxu1 %v2641_v18  ;;  %v2643_v20 = vld [vmem:[%s3433_s2] ss:$8 sps:$4 sm:$0xff]   ;;  %v2645_v21 = vld [vmem:[%s3433_s2 + $0x4] ss:$8 sps:$4 sm:$0xff]   ;;  %v2648_v22 = vld [vmem:[%s3433_s2 + $0x14] ss:$8 sps:$4 sm:$0xff]   ;;  %404 = vmatprep.mubr.bf16.mxu0 %v2793_v44 }
  0x24   :  { %2405 = vmatprep.subr.bf16.mxu1 %v2791_v1  ;;  %372 = vmatprep.subr.bf16.mxu0 %v2645_v21  ;;  %v2646_v23 = vld [vmem:[%s3433_s2 + $0x10] ss:$8 sps:$4 sm:$0xff]   ;;  %v2651_v24 = vld [vmem:[%s3433_s2 + $0x24] ss:$8 sps:$4 sm:$0xff]   ;;  %v2649_v25 = vld [vmem:[%s3433_s2 + $0x20] ss:$8 sps:$4 sm:$0xff]  }
  0x25   :  { %373 = vmatpush1.bf16.msra.mxu0 %v2643_v20  ;;  %v2654_v26 = vld [vmem:[%s3433_s2 + $0x34] ss:$8 sps:$4 sm:$0xff]   ;;  %v2652_v27 = vld [vmem:[%s3433_s2 + $0x30] ss:$8 sps:$4 sm:$0xff]   ;;  %v2657_v28 = vld [vmem:[%s3433_s2 + $0x44] ss:$8 sps:$4 sm:$0xff]  }
  0x26   :  { %374 = vmatprep.subr.bf16.mxu0 %v2648_v22  ;;  %v2655_v29 = vld [vmem:[%s3433_s2 + $0x40] ss:$8 sps:$4 sm:$0xff]   ;;  %v2660_v30 = vld [vmem:[%s3433_s2 + $0x54] ss:$8 sps:$4 sm:$0xff]   ;;  %v2658_v31 = vld [vmem:[%s3433_s2 + $0x50] ss:$8 sps:$4 sm:$0xff]  }
  0x27   :  { %2406 = vmatpush3.bf16.msra.mxu1 %v2642_v19  ;;  %v1983_v32 = vld [vmem:[%s3434_s3] ss:$0 sm:$0xff]  ;;  %v2663_v40 = vld [vmem:[%s3433_s2 + $0x64] ss:$8 sps:$4 sm:$0xff]   ;;  %v2666_v42 = vld [vmem:[%s3433_s2 + $0x74] ss:$8 sps:$4 sm:$0xff]  }
  0x28   :  { %v2661_v41 = vld [vmem:[%s3433_s2 + $0x60] ss:$8 sps:$4 sm:$0xff]   ;;  %v2664_v43 = vld [vmem:[%s3433_s2 + $0x70] ss:$8 sps:$4 sm:$0xff]   ;;  %v2973_v0 = vand.u32 127, %v22_v60 }
  0x29   :  { %375 = vmatpush1.bf16.msra.mxu0 %v2646_v23  ;;  %v2008_v45 = vld [vmem:[%s3434_s3 + $0x1] ss:$0 sm:$0xff]  ;;  %v456_v58 = vld [vmem:[%s3435_s4 + $0x8] sm:$0xff]  ;;  %v2033_v61 = vld [vmem:[%s3434_s3 + $0x2] ss:$0 sm:$0xff] }
  0x2a   :  { %376 = vmatprep.subr.bf16.mxu0 %v2651_v24  ;;  %v455_v57 = vld [vmem:[%s3435_s4] sm:$0xff]  ;;  %vm24_vm1 = vcmp.lt.s32.totalorder %v2973_v0, 80 }
  0x2b   :  { %v2593_v59 = vpack.c.bf16 %v456_v58, %v455_v57  ;;  %v2034_v62 = vld [vmem:[%s3434_s3 + $0x3] ss:$0 sm:$0xff]  ;;  %v2670_v57 = vld [vmem:[%s3432_s1 + $0x98] sm:$0xff]   ;;  %vm3085_vm5 = vmpackc.low %vm24_vm1, %vm24_vm1 }
  0x2c   :  { %v2671_v58 = vld [vmem:[%s3432_s1 + $0xa0] sm:$0xff]  }
  0x2d   :  { %377 = vmatpush1.bf16.msra.mxu0 %v2649_v25  ;;  %2594 = vmatprep.subr.bf16.mxu1 %v2593_v59 }
  0x2e   :  { %378 = vmatprep.subr.bf16.mxu0 %v2654_v26 }
  0x31   :  { %379 = vmatpush1.bf16.msra.mxu0 %v2652_v27 }
  0x32   :  { %380 = vmatprep.subr.bf16.mxu0 %v2657_v28 }
  0x35   :  { %381 = vmatpush1.bf16.msra.mxu0 %v2655_v29 }
  0x36   :  { %382 = vmatprep.subr.bf16.mxu0 %v2660_v30 }
  0x39   :  { %383 = vmatpush1.bf16.msra.mxu0 %v2658_v31 }
  0x3a   :  { %384 = vmatprep.subr.bf16.mxu0 %v2663_v40 }
  0x3d   :  { %385 = vmatpush1.bf16.msra.mxu0 %v2661_v41 }
  0x3e   :  { %386 = vmatprep.subr.bf16.mxu0 %v2666_v42 }
  0x41   :  { %387 = vmatpush1.bf16.msra.mxu0 %v2664_v43 }
  0xf4   :  { %v152_v33 = vpop.f32.mrb[0].mxu0 }
  0xf5   :  { %v2389_v34 = vpop.f32.mrb[1].mxu0  ;;  %v153_v36 = vadd.f32 %v1983_v32, %v152_v33 }
  0xf6   :  { %v155_v35 = vpop.f32.mrb[2].mxu0  ;;  %v30_v34 = vcvt.s32.f32 %v2973_v0  ;;  %v2707_v0 = vld [vmem:[%s3432_s1 + $0x100] sm:$0xff]  }
  0xf7   :  { %v156_v37 = vadd.f32 %v1983_v32, %v155_v35  ;;  %v2390_v38 = vpop.f32.mrb[3].mxu0  ;;  %v26_v32 = vshrl.u32 %v22_v60, 7  ;;  %v2673_v60 = vld [vmem:[%s3432_s1 + $0xb0] sm:$0xff]  }
  0xf9   :  { %v176_v39 = vpack.c.bf16 %v156_v37, %v153_v36  ;;  %v27_v33 = vadd.s32 8, %v26_v32  ;;  %v28_v35 = vcvt.s32.f32 %v26_v32 }
  0xfb   :  { %2408 = vmatmul.mubr.bf16.vlgmr.msra.gmra.mrb[0].mxu1 %v176_v39  ;;  %v31_v38 = vadd.f32 0.5, %v28_v35 }
  0xfc   :  { %2596 = vmatpush3.bf16.xpose.msra.mxu1 %v2593_v59  ;;  %v2672_v59 = vld [vmem:[%s3432_s1 + $0xa8] sm:$0xff]  }
  0xfd   :  { %v33_v41 = vmul.f32 0.125, %v31_v38 }
 0x1ce   :  { %v264_v46 = vpop.f32.mrb[0].mxu1 }
 0x1cf   :  { %v265_v47 = vadd.f32 %v2008_v45, %v264_v46  ;;  %v2409_v48 = vpop.f32.mrb[1].mxu1 }
 0x1d0   :  { %v267_v49 = vpop.f32.mrb[2].mxu1 }
 0x1d1   :  { %v271_v50 = vmax.f32 %v265_v47, 0.0  ;;  %v268_v51 = vadd.f32 %v2008_v45, %v267_v49  ;;  %v2410_v52 = vpop.f32.mrb[3].mxu1 }
 0x1d3   :  { %v272_v53 = vmax.f32 %v268_v51, 0.0  ;;  %v2955_v54 = vadd.f32 %v271_v50, %v153_v36  ;;  %v29_v36 = vcvt.s32.f32 %v27_v33  ;;  %v2667_v51 = vld [vmem:[%s3432_s1 + $0x80] sm:$0xff]  }
 0x1d5   :  { %v2957_v55 = vadd.f32 %v272_v53, %v156_v37  ;;  %v37_v37 = vadd.f32 0.5, %v30_v34  ;;  %v32_v39 = vadd.f32 0.5, %v29_v36  ;;  %v2668_v53 = vld [vmem:[%s3432_s1 + $0x88] sm:$0xff]  }
 0x1d7   :  { %v291_v56 = vpack.c.bf16 %v2957_v55, %v2955_v54  ;;  %v38_v40 = vmul.f32 0.125, %v37_v37  ;;  %v34_v42 = vmul.f32 0.125, %v32_v39 }
 0x1d9   :  { %405 = vmatmul.mubr.bf16.vlgmr.msra.gmra.mrb[4].mxu0 %v291_v56  ;;  %v39_v43 = vfloor.f32 %v38_v40  ;;  %v36_v45 = vfloor.f32 %v34_v42  ;;  %v2669_v56 = vld [vmem:[%s3432_s1 + $0x90] sm:$0xff]  }
 0x1da   :  { %1064 = vmatprep.mubr.bf16.mxu0 %v2793_v44  ;;  %v35_v44 = vfloor.f32 %v33_v41 }
 0x1db   :  { %vm41_vm3 = vcmp.eq.f32.partialorder %v36_v45, %v39_v43 }
 0x1dc   :  { %vm40_vm2 = vcmp.eq.f32.partialorder %v35_v44, %v39_v43  ;;  %v2996_v47 = vsel %vm41_vm3, 1.0, %v2791_v1 }
 0x1dd   :  { %v2993_v46 = vsel %vm40_vm2, 1.0, %v2791_v1 }
 0x2ac   :  { %v406_v63 = vpop.f32.mrb[4].mxu0 }
 0x2ad   :  { %v420_v2 = vadd.f32 %v2033_v61, %v406_v63  ;;  %v408_v3 = vpop.f32.mrb[5].mxu0  ;;  %v2035_v63 = vld [vmem:[%s3435_s4 + $0x10] sm:$0xff] }
 0x2ae   :  { %v2975_v4 = vadd.f32 %v2034_v62, %v408_v3  ;;  %v410_v5 = vpop.f32.mrb[6].mxu0  ;;  %v2038_v3 = vld [vmem:[%s3435_s4 + $0x28] sm:$0xff] }
 0x2af   :  { %v422_v6 = vmax.f32 %v420_v2, 0.0  ;;  %v421_v7 = vadd.f32 %v2033_v61, %v410_v5  ;;  %v412_v8 = vpop.f32.mrb[7].mxu0  ;;  %v2674_v61 = vld [vmem:[%s3432_s1 + $0xb8] sm:$0xff]  }
 0x2b0   :  { %v2977_v9 = vadd.f32 %v2034_v62, %v412_v8  ;;  %v431_v12 = vmax.f32 %v2975_v4, 0.0  ;;  %v2036_v62 = vld [vmem:[%s3435_s4 + $0x18] sm:$0xff]  ;;  %v2037_v8 = vld [vmem:[%s3435_s4 + $0x20] sm:$0xff] }
 0x2b1   :  { %v433_v10 = vmul.f32 0.1118034, %v422_v6  ;;  %v423_v11 = vmax.f32 %v421_v7, 0.0 }
 0x2b2   :  { %v432_v13 = vmax.f32 %v2977_v9, 0.0  ;;  %v546_v6 = vmul.f32 %v2035_v63, %v431_v12  ;;  %v2061_v9 = vld [vmem:[%s3434_s3 + $0x4] ss:$0 sm:$0xff]  ;;  %v2692_v63 = vld [vmem:[%s3433_s2 + $0xd4] ss:$8 sps:$4 sm:$0xff]  }
 0x2b3   :  { %v434_v14 = vmul.f32 0.1118034, %v423_v11  ;;  %v435_v15 = vsel %vm24_vm1, %v433_v10, -1e+30 }
 0x2b4   :  { %v2597_v16 = vpack.c.bf16 %v432_v13, %v431_v12  ;;  %437 = vmax.xlane.f32.xlu0 %v435_v15  ;;  %v547_v2 = vmul.f32 %v2036_v62, %v432_v13  ;;  %v2687_v62 = vld [vmem:[%s3433_s2 + $0xc0] ss:$8 sps:$4 sm:$0xff]  }
 0x2b5   :  { %v436_v17 = vsel %vm24_vm1, %v434_v14, -1e+30 }
 0x2b6   :  { %2598 = vmatprep.subr.bf16.mxu1 %v2597_v16 }
 0x2b8   :  { %439 = vmax.xlane.f32.xlu0 %v436_v17 }
 0x341   :  { %v438_v18 = vpop.xlane.xlu0 %437 }
 0x342   :  { %v441_v19 = vsub.f32 %v435_v15, %v438_v18 }
 0x344   :  { %v443_v20 = vmul.f32 1.442695, %v441_v19 }
 0x345   :  { %v440_v21 = vpop.xlane.xlu0 %439 }
 0x346   :  { %2747 = vpow2.f32 %v443_v20  ;;  %v442_v22 = vsub.f32 %v436_v17, %v440_v21  ;;  %v3059_v17 = vld [vmem:[%s3435_s4 + $0x30] sm:$0xff] }
 0x348   :  { %v445_v23 = vmul.f32 1.442695, %v442_v22  ;;  %v3064_v22 = vld [vmem:[%s3435_s4 + $0x40] sm:$0xff] }
 0x34a   :  { %2749 = vpow2.f32 %v445_v23  ;;  %v3069_v23 = vld [vmem:[%s3435_s4 + $0x38] sm:$0xff] }
 0x350   :  { %v2748_v24 = vpop.eup %2747 }
 0x351   :  { %447 = vadd.xlane.f32.xlu1 %v2748_v24 }
 0x354   :  { %v2750_v25 = vpop.eup %2749 }
 0x355   :  { %449 = vadd.xlane.f32.xlu1 %v2750_v25 }
 0x3de   :  { %v448_v26 = vpop.xlane.xlu1 %447 }
 0x3df   :  { %2751 = vrcp.f32 %v448_v26  ;;  %v3075_v26 = vld [vmem:[%s3435_s4 + $0x48] sm:$0xff] }
 0x3e2   :  { %v450_v27 = vpop.xlane.xlu1 %449 }
 0x3e3   :  { %2753 = vrcp.f32 %v450_v27 }
 0x3e9   :  { %v2752_v28 = vpop.eup %2751 }
 0x3ea   :  { %v452_v29 = vmul.f32 %v2752_v28, %v2748_v24 }
 0x3ec   :  { %2415 = vmatprep.mubr.f32.mxu1 %v452_v29 }
 0x3ed   :  { %v2754_v30 = vpop.eup %2753 }
 0x3ee   :  { %v454_v31 = vmul.f32 %v2754_v30, %v2750_v25 }
 0x3f0   :  { %2416 = vmatmul.mubr.f32.vlgmr.msra.gmra.mrb[4].mxu1 %v454_v31 }
 0x3f1   :  { %2600 = vmatpush3.bf16.msra.mxu1 %v2597_v16 }
 0x3f2   :  { %2425 = vmatprep.subr.bf16.mxu1 %v2791_v1 }
 0x4c3   :  { %v2417_v48 = vpop.f32.mrb[4].mxu1 }
 0x4c4   :  { %v535_v49 = vpop.f32.mrb[5].mxu1  ;;  %v545_v52 = vmul.f32 %v2417_v48, %v2996_v47 }
 0x4c5   :  { %v544_v50 = vmul.f32 %v2993_v46, %v535_v49  ;;  %v2675_v49 = vld [vmem:[%s3433_s2 + $0x80] ss:$8 sps:$4 sm:$0xff]  }
 0x4c7   :  { %2422 = vmatprep.mubr.msk.f32.mxu1 %vm548_vm4, %v544_v50  ;;  %v2677_v50 = vld [vmem:[%s3433_s2 + $0x84] ss:$8 sps:$4 sm:$0xff]  }
 0x4c8   :  { %2423 = vmatmul.mubr.msk.f32.vlgmr.msra.gmra.mrb[6].mxu1 %vm548_vm4, %v545_v52  ;;  %1032 = vmatprep.subr.bf16.mxu0 %v2677_v50  ;;  %v2678_v52 = vld [vmem:[%s3433_s2 + $0x90] ss:$8 sps:$4 sm:$0xff]  }
 0x4c9   :  { %2426 = vmatpush3.bf16.msra.mxu1 %v2667_v51  ;;  %2441 = vmatprep.mubr.msk.bf16.mxu1 %vm2792_vm0, %v2791_v1  ;;  %v2680_v51 = vld [vmem:[%s3433_s2 + $0x94] ss:$8 sps:$4 sm:$0xff]  }
 0x4ca   :  { %2427 = vmatprep.subr.bf16.mxu1 %v2791_v1  ;;  %1033 = vmatpush1.bf16.msra.mxu0 %v2675_v49 }
 0x4cb   :  { %1034 = vmatprep.subr.bf16.mxu0 %v2680_v51 }
 0x4cd   :  { %2428 = vmatpush3.bf16.msra.mxu1 %v2668_v53  ;;  %v2683_v53 = vld [vmem:[%s3433_s2 + $0xa4] ss:$8 sps:$4 sm:$0xff]  }
 0x4ce   :  { %2429 = vmatprep.subr.bf16.mxu1 %v2791_v1  ;;  %1035 = vmatpush1.bf16.msra.mxu0 %v2678_v52 }
 0x4cf   :  { %1036 = vmatprep.subr.bf16.mxu0 %v2683_v53 }
 0x4d1   :  { %2430 = vmatpush3.bf16.msra.mxu1 %v2669_v56  ;;  %v2681_v56 = vld [vmem:[%s3433_s2 + $0xa0] ss:$8 sps:$4 sm:$0xff]  }
 0x4d2   :  { %2431 = vmatprep.subr.bf16.mxu1 %v2791_v1  ;;  %1037 = vmatpush1.bf16.msra.mxu0 %v2681_v56  ;;  %v2126_v56 = vld [vmem:[%s3434_s3 + $0x7] ss:$0 sm:$0xff] }
 0x4d5   :  { %2432 = vmatpush3.bf16.msra.mxu1 %v2670_v57 }
 0x4d6   :  { %2433 = vmatprep.subr.bf16.mxu1 %v2791_v1 }
 0x4d9   :  { %2434 = vmatpush3.bf16.msra.mxu1 %v2671_v58 }
 0x4da   :  { %2435 = vmatprep.subr.bf16.mxu1 %v2791_v1 }
 0x4dd   :  { %2436 = vmatpush3.bf16.msra.mxu1 %v2672_v59  ;;  %v2686_v59 = vld [vmem:[%s3433_s2 + $0xb4] ss:$8 sps:$4 sm:$0xff]  }
 0x4de   :  { %2437 = vmatprep.subr.bf16.mxu1 %v2791_v1  ;;  %1038 = vmatprep.subr.bf16.mxu0 %v2686_v59 }
 0x4e1   :  { %2438 = vmatpush3.bf16.msra.mxu1 %v2673_v60  ;;  %v2684_v60 = vld [vmem:[%s3433_s2 + $0xb0] ss:$8 sps:$4 sm:$0xff]  }
 0x4e2   :  { %2439 = vmatprep.subr.bf16.mxu1 %v2791_v1  ;;  %1039 = vmatpush1.bf16.msra.mxu0 %v2684_v60 }
 0x4e5   :  { %2440 = vmatpush3.bf16.msra.mxu1 %v2674_v61  ;;  %v2689_v61 = vld [vmem:[%s3433_s2 + $0xc4] ss:$8 sps:$4 sm:$0xff]  }
 0x4e6   :  { %1040 = vmatprep.subr.bf16.mxu0 %v2689_v61 }
 0x4e7   :  { %1041 = vmatpush1.bf16.msra.mxu0 %v2687_v62 }
 0x4e8   :  { %1042 = vmatprep.subr.bf16.mxu0 %v2692_v63 }
 0x59b   :  { %v2424_v5 = vpop.f32.mrb[6].mxu1 }
 0x59c   :  { %v627_v7 = vadd.f32 %v2424_v5, %v547_v2  ;;  %v621_v10 = vpop.f32.mrb[7].mxu1  ;;  %v2690_v2 = vld [vmem:[%s3433_s2 + $0xd0] ss:$8 sps:$4 sm:$0xff]   ;;  %v2693_v5 = vld [vmem:[%s3433_s2 + $0xe0] ss:$8 sps:$4 sm:$0xff]  }
 0x59d   :  { %v622_v11 = vadd.f32 %v621_v10, %v546_v6  ;;  %1043 = vmatpush1.bf16.msra.mxu0 %v2690_v2  ;;  %v2698_v6 = vld [vmem:[%s3433_s2 + $0xf4] ss:$8 sps:$4 sm:$0xff]  }
 0x59e   :  { %v631_v14 = vadd.f32 %v2038_v3, %v627_v7  ;;  %v2695_v3 = vld [vmem:[%s3433_s2 + $0xe4] ss:$8 sps:$4 sm:$0xff]   ;;  %v2696_v7 = vld [vmem:[%s3433_s2 + $0xf0] ss:$8 sps:$4 sm:$0xff]  }
 0x59f   :  { %v630_v15 = vadd.f32 %v2037_v8, %v622_v11  ;;  %1044 = vmatprep.subr.bf16.mxu0 %v2695_v3  ;;  %v2699_v8 = vld [vmem:[%s3432_s1 + $0xc0] sm:$0xff]  }
 0x5a1   :  { %v649_v16 = vpack.c.bf16 %v631_v14, %v630_v15  ;;  %1045 = vmatpush1.bf16.msra.mxu0 %v2693_v5 }
 0x5a2   :  { %1046 = vmatprep.subr.bf16.mxu0 %v2698_v6 }
 0x5a3   :  { %2442 = vmatmul.mubr.bf16.vlgmr.msra.gmra.mrb[8].mxu1 %v649_v16 }
 0x5a4   :  { %2449 = vmatprep.mubr.msk.f32.mxu1 %vm548_vm4, %v2993_v46 }
 0x5a5   :  { %1047 = vmatpush1.bf16.msra.mxu0 %v2696_v7 }
 0x5a6   :  { %2493 = vmatprep.subr.bf16.mxu0 %v2791_v1 }
 0x676   :  { %v737_v4 = vpop.f32.mrb[8].mxu1 }
 0x677   :  { %v738_v12 = vadd.f32 %v2061_v9, %v737_v4  ;;  %v2443_v13 = vpop.f32.mrb[9].mxu1 }
 0x678   :  { %v740_v18 = vpop.f32.mrb[10].mxu1 }
 0x679   :  { %v744_v19 = vmax.f32 %v738_v12, 0.0  ;;  %v741_v20 = vadd.f32 %v2061_v9, %v740_v18  ;;  %v2444_v21 = vpop.f32.mrb[11].mxu1 }
 0x67a   :  { %v2701_v21 = vld [vmem:[%s3432_s1 + $0xd0] sm:$0xff]  }
 0x67b   :  { %v746_v24 = vmul.f32 %v3059_v17, %v744_v19  ;;  %v745_v25 = vmax.f32 %v741_v20, 0.0  ;;  %v2700_v20 = vld [vmem:[%s3432_s1 + $0xc8] sm:$0xff]  }
 0x67d   :  { %v748_v27 = vadd.f32 %v3064_v22, %v746_v24  ;;  %v747_v28 = vmul.f32 %v3069_v23, %v745_v25  ;;  %v2702_v24 = vld [vmem:[%s3432_s1 + $0xd8] sm:$0xff]   ;;  %v2703_v25 = vld [vmem:[%s3432_s1 + $0xe0] sm:$0xff]  }
 0x67f   :  { %v749_v29 = vadd.f32 %v3075_v26, %v747_v28  ;;  %v750_v30 = vadd.f32 %v748_v27, %v2955_v54  ;;  %v2704_v27 = vld [vmem:[%s3432_s1 + $0xe8] sm:$0xff]   ;;  %v2705_v28 = vld [vmem:[%s3432_s1 + $0xf0] sm:$0xff]  }
 0x681   :  { %v751_v31 = vadd.f32 %v749_v29, %v2957_v55  ;;  %v2706_v29 = vld [vmem:[%s3432_s1 + $0xf8] sm:$0xff]  }
 0x683   :  { %v2601_v33 = vpack.c.bf16 %v751_v31, %v750_v30 }
 0x685   :  { %2603 = vmatprep.subr.msk.bf16.mxu1 %vm3085_vm5, %v2601_v33 }
 0x686   :  { %2606 = vmatpush3.bf16.msk.msra.mxu1 %vm3085_vm5, %v2601_v33 }
 0x689   :  { %2450 = vmatmul.mubr.msk.f32.vlgmr.msra.gmra.mrb[12].mxu1 %vm548_vm4, %v2996_v47 }
 0x68a   :  { %2456 = vmatprep.mubr.msk.f32.mxu1 %vm548_vm4, %v2993_v46 }
 0x75c   :  { %v2451_v34 = vpop.f32.mrb[12].mxu1 }
 0x75d   :  { %837 = vadd.xlane.f32.xlu1 %v2451_v34  ;;  %v826_v35 = vpop.f32.mrb[13].mxu1 }
 0x75e   :  { %835 = vadd.xlane.f32.xlu0 %v826_v35 }
 0x7ea   :  { %v838_v36 = vpop.xlane.xlu1 %837 }
 0x7eb   :  { %v840_v37 = vmul.f32 0.0015625, %v838_v36  ;;  %v836_v38 = vpop.xlane.xlu0 %835 }
 0x7ec   :  { %v839_v39 = vmul.f32 0.0015625, %v836_v38 }
 0x7ed   :  { %v842_v40 = vsub.f32 %v751_v31, %v840_v37 }
 0x7ee   :  { %v841_v41 = vsub.f32 %v750_v30, %v839_v39  ;;  %v2109_v30 = vld [vmem:[%s3434_s3 + $0x6] ss:$0 sm:$0xff] }
 0x7ef   :  { %v844_v42 = vsel %vm24_vm1, %v842_v40, 0.0 }
 0x7f0   :  { %v846_v43 = vmul.f32 %v844_v42, %v844_v42  ;;  %v843_v44 = vsel %vm24_vm1, %v841_v41, 0.0  ;;  %v2108_v41 = vld [vmem:[%s3434_s3 + $0x5] ss:$0 sm:$0xff] }
 0x7f1   :  { %v845_v45 = vmul.f32 %v843_v44, %v843_v44 }
 0x7f3   :  { %v2607_v48 = vpack.c.bf16 %v846_v43, %v845_v45 }
 0x7f5   :  { %2608 = vmatprep.subr.bf16.mxu1 %v2607_v48 }
 0x7f6   :  { %2610 = vmatpush3.bf16.msra.mxu1 %v2607_v48 }
 0x7f7   :  { %2459 = vmatprep.subr.bf16.mxu1 %v2791_v1 }
 0x7f9   :  { %2457 = vmatmul.mubr.msk.f32.vlgmr.msra.gmra.mrb[14].mxu1 %vm548_vm4, %v2996_v47 }
 0x7fa   :  { %2475 = vmatprep.mubr.msk.bf16.mxu1 %vm2792_vm0, %v2791_v1  ;;  %2460 = vmatpush3.bf16.msra.mxu1 %v2699_v8 }
 0x7fb   :  { %2461 = vmatprep.subr.bf16.mxu1 %v2791_v1 }
 0x7fe   :  { %2462 = vmatpush3.bf16.msra.mxu1 %v2700_v20  ;;  %v2711_v20 = vld [vmem:[%s3432_s1 + $0x120] sm:$0xff]  }
 0x7ff   :  { %2463 = vmatprep.subr.bf16.mxu1 %v2791_v1 }
 0x802   :  { %2464 = vmatpush3.bf16.msra.mxu1 %v2701_v21  ;;  %v2712_v21 = vld [vmem:[%s3432_s1 + $0x128] sm:$0xff]  }
 0x803   :  { %2465 = vmatprep.subr.bf16.mxu1 %v2791_v1 }
 0x806   :  { %2466 = vmatpush3.bf16.msra.mxu1 %v2702_v24  ;;  %v2713_v24 = vld [vmem:[%s3432_s1 + $0x130] sm:$0xff]  }
 0x807   :  { %2467 = vmatprep.subr.bf16.mxu1 %v2791_v1 }
 0x80a   :  { %2468 = vmatpush3.bf16.msra.mxu1 %v2703_v25  ;;  %v2714_v25 = vld [vmem:[%s3432_s1 + $0x138] sm:$0xff]  }
 0x80b   :  { %2469 = vmatprep.subr.bf16.mxu1 %v2791_v1 }
 0x80e   :  { %2470 = vmatpush3.bf16.msra.mxu1 %v2704_v27  ;;  %v2715_v27 = vld [vmem:[%s3432_s1 + $0x140] sm:$0xff]  }
 0x80f   :  { %2471 = vmatprep.subr.bf16.mxu1 %v2791_v1 }
 0x812   :  { %2472 = vmatpush3.bf16.msra.mxu1 %v2705_v28  ;;  %v2716_v28 = vld [vmem:[%s3432_s1 + $0x148] sm:$0xff]  }
 0x813   :  { %2473 = vmatprep.subr.bf16.mxu1 %v2791_v1 }
 0x816   :  { %2474 = vmatpush3.bf16.msra.mxu1 %v2706_v29  ;;  %v2717_v29 = vld [vmem:[%s3432_s1 + $0x150] sm:$0xff]  }
 0x8cc   :  { %v2458_v57 = vpop.f32.mrb[14].mxu1 }
 0x8cd   :  { %924 = vadd.xlane.f32.xlu1 %v2458_v57  ;;  %v913_v58 = vpop.f32.mrb[15].mxu1 }
 0x8ce   :  { %922 = vadd.xlane.f32.xlu0 %v913_v58 }
 0x95a   :  { %v925_v10 = vpop.xlane.xlu1 %924 }
 0x95b   :  { %v927_v11 = vmul.f32 0.0015625, %v925_v10  ;;  %v923_v14 = vpop.xlane.xlu0 %922 }
 0x95c   :  { %v926_v15 = vmul.f32 0.0015625, %v923_v14 }
 0x95d   :  { %v929_v16 = vadd.f32 1e-05, %v927_v11 }
 0x95e   :  { %v928_v9 = vadd.f32 1e-05, %v926_v15 }
 0x95f   :  { %2755 = vrsqrt.f32 %v929_v16 }
 0x960   :  { %2757 = vrsqrt.f32 %v928_v9 }
 0x969   :  { %v2756_v4 = vpop.eup %2755 }
 0x96a   :  { %v2758_v12 = vpop.eup %2757  ;;  %v933_v13 = vmul.f32 %v2756_v4, %v844_v42 }
 0x96b   :  { %v932_v18 = vmul.f32 %v2758_v12, %v843_v44  ;;  %v2708_v12 = vld [vmem:[%s3432_s1 + $0x108] sm:$0xff]  }
 0x96d   :  { %v951_v19 = vpack.c.bf16 %v933_v13, %v932_v18 }
 0x96f   :  { %1065 = vmatmul.mubr.bf16.vlgmr.msra.gmra.mrb[8].mxu0 %v951_v19  ;;  %v2710_v19 = vld [vmem:[%s3432_s1 + $0x118] sm:$0xff]  }
 0x970   :  { %2509 = vmatprep.mubr.msk.bf16.mxu0 %vm2792_vm0, %v2791_v1  ;;  %2494 = vmatpush3.bf16.msra.mxu0 %v2707_v0 }
 0x971   :  { %2495 = vmatprep.subr.bf16.mxu0 %v2791_v1 }
 0x974   :  { %2496 = vmatpush3.bf16.msra.mxu0 %v2708_v12 }
 0x975   :  { %2497 = vmatprep.subr.bf16.mxu0 %v2791_v1 }
 0xa42   :  { %v1066_v31 = vpop.f32.mrb[8].mxu0 }
 0xa43   :  { %v1068_v33 = vpop.f32.mrb[9].mxu0  ;;  %v1080_v44 = vadd.f32 %v2108_v41, %v1066_v31  ;;  %v2719_v31 = vld [vmem:[%s3432_s1 + $0x160] sm:$0xff]  }
 0xa44   :  { %v1087_v34 = vadd.f32 %v2109_v30, %v1068_v33  ;;  %v1070_v35 = vpop.f32.mrb[10].mxu0  ;;  %v2720_v33 = vld [vmem:[%s3432_s1 + $0x168] sm:$0xff]  }
 0xa45   :  { %v1072_v36 = vpop.f32.mrb[11].mxu0  ;;  %v1081_v50 = vadd.f32 %v2108_v41, %v1070_v35 }
 0xa46   :  { %v1089_v37 = vmul.f32 0.5, %v1087_v34  ;;  %v1088_v38 = vadd.f32 %v2109_v30, %v1072_v36  ;;  %v2718_v30 = vld [vmem:[%s3432_s1 + $0x158] sm:$0xff]  }
 0xa48   :  { %2759 = vtanh.f32 %v1089_v37  ;;  %v1090_v39 = vmul.f32 0.5, %v1088_v38 }
 0xa4a   :  { %2761 = vtanh.f32 %v1090_v39 }
 0xa52   :  { %v2760_v40 = vpop.eup %2759 }
 0xa53   :  { %v1093_v42 = vadd.f32 1.0, %v2760_v40 }
 0xa54   :  { %v2762_v43 = vpop.eup %2761 }
 0xa55   :  { %v1095_v45 = vmul.f32 0.5, %v1093_v42  ;;  %v1094_v48 = vadd.f32 1.0, %v2762_v43 }
 0xa57   :  { %v1097_v49 = vmul.f32 %v1095_v45, %v1080_v44  ;;  %v1096_v51 = vmul.f32 0.5, %v1094_v48 }
 0xa59   :  { %v1098_v52 = vmul.f32 %v1096_v51, %v1081_v50  ;;  %v2724_v50 = vld [vmem:[%s3432_s1 + $0x188] sm:$0xff]   ;;  %v2725_v51 = vld [vmem:[%s3432_s1 + $0x190] sm:$0xff]  }
 0xa5b   :  { %v1116_v53 = vpack.c.bf16 %v1098_v52, %v1097_v49  ;;  %v2721_v49 = vld [vmem:[%s3432_s1 + $0x170] sm:$0xff]   ;;  %v2726_v52 = vld [vmem:[%s3432_s1 + $0x198] sm:$0xff]  }
 0xa5d   :  { %2476 = vmatmul.mubr.bf16.vlgmr.msra.gmra.mrb[16].mxu1 %v1116_v53  ;;  %v2727_v53 = vld [vmem:[%s3432_s1 + $0x1a0] sm:$0xff]  }
 0xa5e   :  { %2483 = vmatprep.mubr.msk.f32.mxu1 %vm548_vm4, %v2993_v46 }
 0xb30   :  { %v1204_v57 = vpop.f32.mrb[16].mxu1 }
 0xb31   :  { %v1205_v58 = vadd.f32 %v2126_v56, %v1204_v57  ;;  %v2477_v59 = vpop.f32.mrb[17].mxu1  ;;  %v2157_v57 = vld [vmem:[%s3434_s3 + $0x8] ss:$0 sm:$0xff] }
 0xb32   :  { %v1207_v60 = vpop.f32.mrb[18].mxu1 }
 0xb33   :  { %v1211_v61 = vadd.f32 %v1205_v58, %v932_v18  ;;  %v1208_v62 = vadd.f32 %v2126_v56, %v1207_v60  ;;  %v2478_v63 = vpop.f32.mrb[19].mxu1  ;;  %v2728_v56 = vld [vmem:[%s3432_s1 + $0x1a8] sm:$0xff]  }
 0xb35   :  { %v1213_v2 = vmul.f32 %v3059_v17, %v1211_v61  ;;  %v1212_v3 = vadd.f32 %v1208_v62, %v933_v13  ;;  %v2709_v13 = vld [vmem:[%s3432_s1 + $0x110] sm:$0xff]  }
 0xb36   :  { %2498 = vmatpush3.bf16.msra.mxu0 %v2709_v13  ;;  %v2737_v13 = vld [vmem:[%s3432_s1 + $0x1f0] sm:$0xff]  }
 0xb37   :  { %v1214_v5 = vmul.f32 %v3069_v23, %v1212_v3  ;;  %v1215_v6 = vadd.f32 %v3064_v22, %v1213_v2  ;;  %2499 = vmatprep.subr.bf16.mxu0 %v2791_v1 }
 0xb39   :  { %v1216_v7 = vadd.f32 %v3075_v26, %v1214_v5 }
 0xb3a   :  { %2500 = vmatpush3.bf16.msra.mxu0 %v2710_v19  ;;  %v2740_v19 = vld [vmem:[%s3432_s1 + $0x208] sm:$0xff]  }
 0xb3b   :  { %v2611_v8 = vpack.c.bf16 %v1216_v7, %v1215_v6  ;;  %2501 = vmatprep.subr.bf16.mxu0 %v2791_v1 }
 0xb3d   :  { %2613 = vmatprep.subr.msk.bf16.mxu1 %vm3085_vm5, %v2611_v8 }
 0xb3e   :  { %2616 = vmatpush3.bf16.msk.msra.mxu1 %vm3085_vm5, %v2611_v8  ;;  %2502 = vmatpush3.bf16.msra.mxu0 %v2711_v20  ;;  %v2731_v8 = vld [vmem:[%s3432_s1 + $0x1c0] sm:$0xff]   ;;  %v2741_v20 = vld [vmem:[%s3432_s1 + $0x210] sm:$0xff]  }
 0xb3f   :  { %2503 = vmatprep.subr.bf16.mxu0 %v2791_v1 }
 0xb41   :  { %2484 = vmatmul.mubr.msk.f32.vlgmr.msra.gmra.mrb[20].mxu1 %vm548_vm4, %v2996_v47 }
 0xb42   :  { %2490 = vmatprep.mubr.msk.f32.mxu1 %vm548_vm4, %v2993_v46  ;;  %2504 = vmatpush3.bf16.msra.mxu0 %v2712_v21  ;;  %v2742_v21 = vld [vmem:[%s3432_s1 + $0x218] sm:$0xff]  }
 0xb43   :  { %2505 = vmatprep.subr.bf16.mxu0 %v2791_v1 }
 0xb46   :  { %2506 = vmatpush3.bf16.msra.mxu0 %v2713_v24  ;;  %v2743_v24 = vld [vmem:[%s3432_s1 + $0x220] sm:$0xff]  }
 0xb47   :  { %2507 = vmatprep.subr.bf16.mxu0 %v2791_v1 }
 0xb4a   :  { %2508 = vmatpush3.bf16.msra.mxu0 %v2714_v25  ;;  %v2744_v25 = vld [vmem:[%s3432_s1 + $0x228] sm:$0xff]  }
 0xb4b   :  { %2533 = vmatprep.subr.bf16.mxu0 %v2791_v1 }
 0xc14   :  { %v2485_v17 = vpop.f32.mrb[20].mxu1 }
 0xc15   :  { %1296 = vadd.xlane.f32.xlu1 %v2485_v17  ;;  %v1285_v23 = vpop.f32.mrb[21].mxu1  ;;  %v2732_v17 = vld [vmem:[%s3432_s1 + $0x1c8] sm:$0xff]  }
 0xc16   :  { %1294 = vadd.xlane.f32.xlu0 %v1285_v23  ;;  %v2733_v23 = vld [vmem:[%s3432_s1 + $0x1d0] sm:$0xff]  }
 0xca2   :  { %v1297_v22 = vpop.xlane.xlu1 %1296 }
 0xca3   :  { %v1299_v10 = vmul.f32 0.0015625, %v1297_v22  ;;  %v1295_v26 = vpop.xlane.xlu0 %1294  ;;  %v2734_v22 = vld [vmem:[%s3432_s1 + $0x1d8] sm:$0xff]  }
 0xca4   :  { %v1298_v11 = vmul.f32 0.0015625, %v1295_v26  ;;  %v2736_v26 = vld [vmem:[%s3432_s1 + $0x1e8] sm:$0xff]  }
 0xca5   :  { %v1301_v14 = vsub.f32 %v1216_v7, %v1299_v10  ;;  %v2730_v7 = vld [vmem:[%s3432_s1 + $0x1b8] sm:$0xff]   ;;  %v2735_v10 = vld [vmem:[%s3432_s1 + $0x1e0] sm:$0xff]  }
 0xca6   :  { %v1300_v15 = vsub.f32 %v1215_v6, %v1298_v11  ;;  %v2729_v6 = vld [vmem:[%s3432_s1 + $0x1b0] sm:$0xff]   ;;  %v2182_v11 = vld [vmem:[%s3434_s3 + $0x9] ss:$0 sm:$0xff] }
 0xca7   :  { %v3213_v32 = vsel %vm24_vm1, %v1301_v14, 0.0 }
 0xca8   :  { %v1305_v16 = vmul.f32 %v3213_v32, %v3213_v32  ;;  %v3219_v46 = vsel %vm24_vm1, %v1300_v15, 0.0 }
 0xca9   :  { %v1304_v9 = vmul.f32 %v3219_v46, %v3219_v46 }
 0xcab   :  { %v2617_v4 = vpack.c.bf16 %v1305_v16, %v1304_v9 }
 0xcad   :  { %2618 = vmatprep.subr.bf16.mxu1 %v2617_v4 }
 0xcae   :  { %2620 = vmatpush3.bf16.msra.mxu1 %v2617_v4 }
 0xcaf   :  { %2513 = vmatprep.subr.bf16.mxu1 %v2791_v1 }
 0xcb1   :  { %2491 = vmatmul.mubr.msk.f32.vlgmr.msra.gmra.mrb[22].mxu1 %vm548_vm4, %v2996_v47 }
 0xcb2   :  { %2529 = vmatprep.mubr.msk.bf16.mxu1 %vm2792_vm0, %v2791_v1  ;;  %2514 = vmatpush3.bf16.msra.mxu1 %v2715_v27  ;;  %v2207_v27 = vld [vmem:[%s3434_s3 + $0xa] ss:$0 sm:$0xff] }
 0xcb3   :  { %2515 = vmatprep.subr.bf16.mxu1 %v2791_v1 }
 0xcb6   :  { %2516 = vmatpush3.bf16.msra.mxu1 %v2716_v28 }
 0xcb7   :  { %2517 = vmatprep.subr.bf16.mxu1 %v2791_v1 }
 0xcba   :  { %2518 = vmatpush3.bf16.msra.mxu1 %v2717_v29 }
 0xcbb   :  { %2519 = vmatprep.subr.bf16.mxu1 %v2791_v1 }
 0xcbe   :  { %2520 = vmatpush3.bf16.msra.mxu1 %v2718_v30 }
 0xcbf   :  { %2521 = vmatprep.subr.bf16.mxu1 %v2791_v1 }
 0xcc2   :  { %2522 = vmatpush3.bf16.msra.mxu1 %v2719_v31 }
 0xcc3   :  { %2523 = vmatprep.subr.bf16.mxu1 %v2791_v1 }
 0xcc6   :  { %2524 = vmatpush3.bf16.msra.mxu1 %v2720_v33 }
 0xcc7   :  { %2525 = vmatprep.subr.bf16.mxu1 %v2791_v1 }
 0xcca   :  { %2526 = vmatpush3.bf16.msra.mxu1 %v2721_v49 }
 0xccb   :  { %2527 = vmatprep.subr.bf16.mxu1 %v2791_v1 }
 0xd84   :  { %v2492_v47 = vpop.f32.mrb[22].mxu1 }
 0xd85   :  { %1383 = vadd.xlane.f32.xlu1 %v2492_v47  ;;  %v1372_v18 = vpop.f32.mrb[23].mxu1  ;;  %v2738_v47 = vld [vmem:[%s3432_s1 + $0x1f8] sm:$0xff]  }
 0xd86   :  { %1381 = vadd.xlane.f32.xlu0 %v1372_v18  ;;  %v2739_v18 = vld [vmem:[%s3432_s1 + $0x200] sm:$0xff]  }
 0xe12   :  { %v1384_v34 = vpop.xlane.xlu1 %1383 }
 0xe13   :  { %v1386_v35 = vmul.f32 0.0015625, %v1384_v34  ;;  %v1382_v36 = vpop.xlane.xlu0 %1381 }
 0xe14   :  { %v1385_v37 = vmul.f32 0.0015625, %v1382_v36 }
 0xe15   :  { %v1388_v38 = vadd.f32 1e-05, %v1386_v35 }
 0xe16   :  { %v1387_v39 = vadd.f32 1e-05, %v1385_v37 }
 0xe17   :  { %2763 = vrsqrt.f32 %v1388_v38  ;;  %v2745_v38 = vld [vmem:[%s3432_s1 + $0x230] sm:$0xff]  }
 0xe18   :  { %2765 = vrsqrt.f32 %v1387_v39  ;;  %v2746_v39 = vld [vmem:[%s3432_s1 + $0x238] sm:$0xff]  }
 0xe21   :  { %v2764_v40 = vpop.eup %2763 }
 0xe22   :  { %v2766_v41 = vpop.eup %2765  ;;  %v1392_v42 = vmul.f32 %v2764_v40, %v3213_v32  ;;  %v2232_v40 = vld [vmem:[%s3434_s3 + $0xb] ss:$0 sm:$0xff] }
 0xe23   :  { %v1391_v43 = vmul.f32 %v2766_v41, %v3219_v46 }
 0xe24   :  { %v3287_v44 = vadd.f32 %v1392_v42, %v2957_v55  ;;  %v2722_v55 = vld [vmem:[%s3432_s1 + $0x178] sm:$0xff]  }
 0xe25   :  { %v3290_v45 = vadd.f32 %v1391_v43, %v2955_v54  ;;  %2528 = vmatpush3.bf16.msra.mxu1 %v2722_v55  ;;  %v2723_v54 = vld [vmem:[%s3432_s1 + $0x180] sm:$0xff]   ;;  %s2794_s1 = smov [#allocation2]  }
 0xe26   :  { %2553 = vmatprep.subr.bf16.mxu1 %v2791_v1  ;;  %s1970_s7 = sshll.u32 %s2794_s1, 4  ;;  %s1971_s7 = int_to_ptr.vmem [resolvable:$true] %s1970_s7 }
 0xe27   :  { %v1412_v48 = vpack.c.bf16 %v3287_v44, %v3290_v45  ;;  %s2767_s8 = scalar_lea.vmem %s1971_s7, 256  ;;  %p2772_p1 = scmp.lt.s32.totalorder %s1971_s7, %s1971_s7 }
 0xe28   :  { %p2768_p0 = scmp.ne.s32.totalorder %s1971_s7, %s2767_s8  ;;  %p2773_p2 = scmp.lt.s32.totalorder %s2767_s8, %s2767_s8 }
 0xe29   :  { %2510 = vmatmul.mubr.bf16.vlgmr.msra.gmra.mrb[12].mxu0 %v1412_v48 }
 0xe2a   :  { %2549 = vmatprep.mubr.msk.bf16.mxu0 %vm2792_vm0, %v2791_v1  ;;  %2534 = vmatpush3.bf16.msra.mxu0 %v2723_v54  ;;  %p2774_p3 = por %p2773_p2, %p2772_p1 }
 0xe2b   :  { %2535 = vmatprep.subr.bf16.mxu0 %v2791_v1 }
 0xe2c   :  { %p2775_p4 = pnand %p2774_p3, %p2768_p0 }
 0xe2e   :  { %2536 = vmatpush3.bf16.msra.mxu0 %v2724_v50 }
 0xe2f   :  { %2537 = vmatprep.subr.bf16.mxu0 %v2791_v1 }
 0xe32   :  { %2538 = vmatpush3.bf16.msra.mxu0 %v2725_v51 }
 0xe33   :  { %2539 = vmatprep.subr.bf16.mxu0 %v2791_v1 }
 0xe36   :  { %2540 = vmatpush3.bf16.msra.mxu0 %v2726_v52 }
 0xe37   :  { %2541 = vmatprep.subr.bf16.mxu0 %v2791_v1 }
 0xe3a   :  { %2542 = vmatpush3.bf16.msra.mxu0 %v2727_v53 }
 0xe3b   :  { %2543 = vmatprep.subr.bf16.mxu0 %v2791_v1 }
 0xe3e   :  { %2544 = vmatpush3.bf16.msra.mxu0 %v2728_v56 }
 0xe3f   :  { %2545 = vmatprep.subr.bf16.mxu0 %v2791_v1 }
 0xe42   :  { %2546 = vmatpush3.bf16.msra.mxu0 %v2729_v6 }
 0xe43   :  { %2547 = vmatprep.subr.bf16.mxu0 %v2791_v1 }
 0xe46   :  { %2548 = vmatpush3.bf16.msra.mxu0 %v2730_v7 }
 0xe47   :  { %2573 = vmatprep.subr.bf16.mxu0 %v2791_v1 }
 0xefc   :  { %v1500_v58 = vpop.f32.mrb[12].mxu0 }
 0xefd   :  { %v1501_v59 = vadd.f32 %v2157_v57, %v1500_v58  ;;  %v2511_v60 = vpop.f32.mrb[13].mxu0 }
 0xefe   :  { %v1503_v61 = vpop.f32.mrb[14].mxu0 }
 0xeff   :  { %v1504_v62 = vadd.f32 %v2157_v57, %v1503_v61  ;;  %v2512_v63 = vpop.f32.mrb[15].mxu0  ;;  %v1507_v2 = vmax.f32 %v1501_v59, 0.0 }
 0xf01   :  { %v1508_v3 = vmax.f32 %v1504_v62, 0.0 }
 0xf03   :  { %v1526_v5 = vpack.c.bf16 %v1508_v3, %v1507_v2 }
 0xf05   :  { %2530 = vmatmul.mubr.bf16.vlgmr.msra.gmra.mrb[24].mxu1 %v1526_v5 }
 0xf06   :  { %2569 = vmatprep.mubr.msk.bf16.mxu1 %vm2792_vm0, %v2791_v1  ;;  %2554 = vmatpush3.bf16.msra.mxu1 %v2731_v8 }
 0xf07   :  { %2555 = vmatprep.subr.bf16.mxu1 %v2791_v1 }
 0xf0a   :  { %2556 = vmatpush3.bf16.msra.mxu1 %v2732_v17 }
 0xf0b   :  { %2557 = vmatprep.subr.bf16.mxu1 %v2791_v1 }
 0xf0e   :  { %2558 = vmatpush3.bf16.msra.mxu1 %v2733_v23 }
 0xf0f   :  { %2559 = vmatprep.subr.bf16.mxu1 %v2791_v1 }
 0xf12   :  { %2560 = vmatpush3.bf16.msra.mxu1 %v2734_v22 }
 0xf13   :  { %2561 = vmatprep.subr.bf16.mxu1 %v2791_v1 }
 0xf16   :  { %2562 = vmatpush3.bf16.msra.mxu1 %v2735_v10 }
 0xf17   :  { %2563 = vmatprep.subr.bf16.mxu1 %v2791_v1 }
 0xf1a   :  { %2564 = vmatpush3.bf16.msra.mxu1 %v2736_v26 }
 0xf1b   :  { %2565 = vmatprep.subr.bf16.mxu1 %v2791_v1 }
 0xf1e   :  { %2566 = vmatpush3.bf16.msra.mxu1 %v2737_v13 }
 0xf1f   :  { %2567 = vmatprep.subr.bf16.mxu1 %v2791_v1 }
 0xf22   :  { %2568 = vmatpush3.bf16.msra.mxu1 %v2738_v47 }
 0xfd8   :  { %v1614_v14 = vpop.f32.mrb[24].mxu1 }
 0xfd9   :  { %v1615_v15 = vadd.f32 %v2182_v11, %v1614_v14  ;;  %v2531_v32 = vpop.f32.mrb[25].mxu1 }
 0xfda   :  { %v1617_v16 = vpop.f32.mrb[26].mxu1 }
 0xfdb   :  { %v1618_v46 = vadd.f32 %v2182_v11, %v1617_v16  ;;  %v2532_v9 = vpop.f32.mrb[27].mxu1  ;;  %v1621_v4 = vadd.f32 %v1615_v15, %v3290_v45 }
 0xfdd   :  { %v1622_v0 = vadd.f32 %v1618_v46, %v3287_v44 }
 0xfdf   :  { %v1640_v12 = vpack.c.bf16 %v1622_v0, %v1621_v4 }
 0xfe1   :  { %2550 = vmatmul.mubr.bf16.vlgmr.msra.gmra.mrb[16].mxu0 %v1640_v12 }
 0xfe2   :  { %2589 = vmatprep.mubr.msk.bf16.mxu0 %vm2792_vm0, %v2791_v1  ;;  %2574 = vmatpush3.bf16.msra.mxu0 %v2739_v18 }
 0xfe3   :  { %2575 = vmatprep.subr.bf16.mxu0 %v2791_v1 }
 0xfe6   :  { %2576 = vmatpush3.bf16.msra.mxu0 %v2740_v19 }
 0xfe7   :  { %2577 = vmatprep.subr.bf16.mxu0 %v2791_v1 }
 0xfea   :  { %2578 = vmatpush3.bf16.msra.mxu0 %v2741_v20 }
 0xfeb   :  { %2579 = vmatprep.subr.bf16.mxu0 %v2791_v1 }
 0xfee   :  { %2580 = vmatpush3.bf16.msra.mxu0 %v2742_v21 }
 0xfef   :  { %2581 = vmatprep.subr.bf16.mxu0 %v2791_v1 }
 0xff2   :  { %2582 = vmatpush3.bf16.msra.mxu0 %v2743_v24 }
 0xff3   :  { %2583 = vmatprep.subr.bf16.mxu0 %v2791_v1 }
 0xff6   :  { %2584 = vmatpush3.bf16.msra.mxu0 %v2744_v25 }
 0xff7   :  { %2585 = vmatprep.subr.bf16.mxu0 %v2791_v1 }
 0xffa   :  { %2586 = vmatpush3.bf16.msra.mxu0 %v2745_v38 }
 0xffb   :  { %2587 = vmatprep.subr.bf16.mxu0 %v2791_v1  ;;  %v2257_v1 = vld [vmem:[%s3434_s3 + $0xc] ss:$0 sm:$0xff] }
 0xffe   :  { %2588 = vmatpush3.bf16.msra.mxu0 %v2746_v39 }
0x10b4   :  { %v1728_v28 = vpop.f32.mrb[16].mxu0 }
0x10b5   :  { %v1729_v29 = vadd.f32 %v2207_v27, %v1728_v28  ;;  %v2551_v30 = vpop.f32.mrb[17].mxu0 }
0x10b6   :  { %v1731_v31 = vpop.f32.mrb[18].mxu0 }
0x10b7   :  { %v1732_v33 = vadd.f32 %v2207_v27, %v1731_v31  ;;  %v2552_v34 = vpop.f32.mrb[19].mxu0  ;;  %v1735_v35 = vmax.f32 %v1729_v29, 0.0 }
0x10b9   :  { %v1736_v36 = vmax.f32 %v1732_v33, 0.0 }
0x10bb   :  { %v1754_v37 = vpack.c.bf16 %v1736_v36, %v1735_v35 }
0x10bd   :  { %2570 = vmatmul.mubr.bf16.vlgmr.msra.gmra.mrb[28].mxu1 %v1754_v37 }
0x1190   :  { %v1842_v41 = vpop.f32.mrb[28].mxu1 }
0x1191   :  { %v1843_v42 = vadd.f32 %v2232_v40, %v1842_v41  ;;  %v2571_v43 = vpop.f32.mrb[29].mxu1 }
0x1192   :  { %v1845_v44 = vpop.f32.mrb[30].mxu1 }
0x1193   :  { %v1846_v45 = vadd.f32 %v2232_v40, %v1845_v44  ;;  %v2572_v48 = vpop.f32.mrb[31].mxu1  ;;  %v1849_v49 = vadd.f32 %v1843_v42, %v1621_v4 }
0x1195   :  { %v1850_v55 = vadd.f32 %v1846_v45, %v1622_v0 }
0x1197   :  { %v1868_v54 = vpack.c.bf16 %v1850_v55, %v1849_v49 }
0x1199   :  { %2590 = vmatmul.mubr.bf16.vlgmr.msra.gmra.mrb[20].mxu0 %v1868_v54 }
0x126c   :  { %v1956_v50 = vpop.f32.mrb[20].mxu0 }
0x126d   :  { %v1957_v51 = vadd.f32 %v2257_v1, %v1956_v50  ;;  %v2591_v52 = vpop.f32.mrb[21].mxu0 }
0x126e   :  { %v1959_v53 = vpop.f32.mrb[22].mxu0 }
0x126f   :  { %1963 = vst [vmem:[#allocation2] sm:$0xff] %v1957_v51  ;;  %v1960_v56 = vadd.f32 %v2257_v1, %v1959_v53  ;;  %v2592_v57 = vpop.f32.mrb[23].mxu0 }
0x1271   :  { %1964 = vst [vmem:[#allocation2 + $0x8] sm:$0xff] %v1960_v56 }
0x1272   :  { %2778 = shalt.err (!%p2775_p4)
}
0x1273   :  { %s2779_s9 = scalar_lea.hbm %s3436_s5, 256 }
0x1274   :  { %p2780_p5 = scmp.ne.s32.totalorder %s3436_s5, %s2779_s9  ;;  %p2783_p6 = scmp.lt.u32.totalorder %s2779_s9, %s3436_s5 }
0x1276   :  { %p2785_p7 = pnand %p2783_p6, %p2780_p5 }
0x1278   :  { %2788 = shalt.err (!%p2785_p7)
}
0x1279   :  { %s2795_s14 = smov 128   ;;  %s2796_s15 = smov 8  }
0x127a   :  { %1976 = dma.vmem_to_hbm [thread:$0]  %s1971_s7, 256, %s3436_s5, [#allocation3], %s2795_s14, %s2795_s14, %s2796_s15  }
0x127b   :  { %2789 = dma.done.wait [#allocation3], 256  }
0x127c   :  { %2790 = vsyncadd [#allocation3], 4294967040 }
0x127d   :  { %1980 = vsyncpa [#allocation3], 1 }

</bundles_post_ra>
